<compile_context>
chip_gen: v6e
topology: v6e:2x2x1
jax: 0.10.0
libtpu: 0.0.40
codegen_flags: <defaults>
</compile_context>

<pallas_src>
import jax
import jax.numpy as jnp
from jax.experimental import pallas as pl
from jax.experimental.pallas import tpu as pltpu

EPS = 1e-5


def _make_kernel(W, S, L):
    """Fused ResPath kernel. Layout: (C_pad, S) with S = N*H*W on lanes."""
    offsets = [(dy, dx) for dy in (-1, 0, 1) for dx in (-1, 0, 1)]

    def kernel(x_ref, w1_ref, w3_ref, vec_ref, mask_ref, o_ref):
        x = x_ref[...].astype(jnp.float32)        # (Cp, S)
        mask = mask_ref[...]                       # (9*Cp, S) tap-validity mask

        for l in range(L):                         # static loop over blocks
            # ---- shortcut: 1x1 conv == channel-mixing matmul ----
            sc = jnp.dot(w1_ref[l], x, preferred_element_type=jnp.float32)
            sc = sc + vec_ref[l, 0]                # + b1   (Cp,1) broadcast

            # ---- main path: 3x3 conv (padding=1) as ONE im2col matmul ----
            # taps via XLU lane rolls; zero padding handled by the mask.
            taps = []
            for (dy, dx) in offsets:
                d = dy * W + dx                    # flat-spatial shift
                if d == 0:
                    taps.append(x)
                else:
                    # shifted[s] = x[(s + d) mod S]
                    taps.append(pltpu.roll(x, shift=(-d) % S, axis=1))
            patches = jnp.concatenate(taps, axis=0) * mask      # (9*Cp, S)
            y = jnp.dot(w3_ref[l], patches, preferred_element_type=jnp.float32)
            y = y + vec_ref[l, 1]                  # + b3
            y = jnp.maximum(y, 0.0)                # relu

            # ---- BatchNorm2d #1 (batch stats), folded into one FMA ----
            mu = jnp.mean(y, axis=1, keepdims=True)
            var = jnp.mean((y - mu) ** 2, axis=1, keepdims=True)
            scale = vec_ref[l, 2] * jax.lax.rsqrt(var + EPS)     # g1
            y = y * scale + (vec_ref[l, 3] - mu * scale)         # be1

            # ---- residual add + relu ----
            y = jnp.maximum(sc + y, 0.0)

            # ---- BatchNorm2d #2 ----
            mu = jnp.mean(y, axis=1, keepdims=True)
            var = jnp.mean((y - mu) ** 2, axis=1, keepdims=True)
            scale = vec_ref[l, 4] * jax.lax.rsqrt(var + EPS)     # g2
            x = y * scale + (vec_ref[l, 5] - mu * scale)         # be2

        o_ref[...] = x.astype(o_ref.dtype)

    return kernel


def respath_forward(x_nchw, params_list):
    """ResPath forward: input/output in PyTorch NCHW layout."""
    N, C, H, W = x_nchw.shape
    L = len(params_list)
    S = N * H * W
    Cp = ((C + 7) // 8) * 8      # pad channels to the f32 sublane tile (8)

    # activation: NCHW -> (C, N*H*W), channel rows zero-padded to Cp
    x = jnp.transpose(x_nchw, (1, 0, 2, 3)).reshape(C, S)
    x = jnp.pad(x, ((0, Cp - C), (0, 0)))

    # ---- pack parameters (stacked per block) ----
    pc = Cp - C
    w1 = jnp.stack([jnp.pad(p["w1"], ((0, pc), (0, pc))) for p in params_list])

    w3_list = []
    for p in params_list:
        w = jnp.transpose(p["w3"], (0, 2, 3, 1))          # (O, KH, KW, I)
        w = jnp.pad(w, ((0, pc), (0, 0), (0, 0), (0, pc)))
        w3_list.append(w.reshape(Cp, 9 * Cp))             # col = tap*Cp + c_in
    w3 = jnp.stack(w3_list)                               # (L, Cp, 9*Cp)

    def vecp(v):
        return jnp.pad(v, (0, pc)).reshape(Cp, 1)

    vecs = jnp.stack([
        jnp.stack([vecp(p[k]) for k in ("b1", "b3", "g1", "be1", "g2", "be2")])
        for p in params_list])                            # (L, 6, Cp, 1)

    # ---- zero-padding validity masks for the 9 conv taps ----
    s = jnp.arange(S, dtype=jnp.int32)
    wi = s % W
    hi = (s // W) % H
    rows = []
    for dy in (-1, 0, 1):
        for dx in (-1, 0, 1):
            valid = ((hi + dy >= 0) & (hi + dy < H) &
                     (wi + dx >= 0) & (wi + dx < W)).astype(jnp.float32)
            rows.append(jnp.broadcast_to(valid[None, :], (Cp, S)))
    mask = jnp.concatenate(rows, axis=0)                  # (9*Cp, S)

    kernel = _make_kernel(W, S, L)
    vspec = pl.BlockSpec(memory_space=pltpu.MemorySpace.VMEM)

    flops = int(2 * L * S * Cp * (Cp + 9 * Cp) + 12 * L * Cp * S)
    bytes_accessed = int(4 * (2 * Cp * S + w1.size + w3.size + vecs.size + mask.size))

    out = pl.pallas_call(
        kernel,
        out_shape=jax.ShapeDtypeStruct((Cp, S), jnp.float32),
        in_specs=[vspec] * 5,
        out_specs=vspec,
        compiler_params=pltpu.CompilerParams(vmem_limit_bytes=32 * 1024 * 1024),
        cost_estimate=pl.CostEstimate(flops=flops,
                                      transcendentals=int(4 * L * Cp),
                                      bytes_accessed=bytes_accessed),
    )(x, w1, w3, vecs, mask)

    out = out[:C].reshape(C, N, H, W)
    return jnp.transpose(out, (1, 0, 2, 3)).astype(x_nchw.dtype)


def init_params(key, channels, length):
    """PyTorch-layout parameters: w1 (O,I), w3 (O,I,3,3), per-channel vectors."""
    params = []
    for i in range(length):
        k = jax.random.split(jax.random.fold_in(key, i), 8)
        params.append(dict(
            w1=0.3 * jax.random.normal(k[0], (channels, channels), jnp.float32),
            b1=0.1 * jax.random.normal(k[1], (channels,), jnp.float32),
            w3=0.1 * jax.random.normal(k[2], (channels, channels, 3, 3), jnp.float32),
            b3=0.1 * jax.random.normal(k[3], (channels,), jnp.float32),
            g1=1.0 + 0.1 * jax.random.normal(k[4], (channels,), jnp.float32),
            be1=0.1 * jax.random.normal(k[5], (channels,), jnp.float32),
            g2=1.0 + 0.1 * jax.random.normal(k[6], (channels,), jnp.float32),
            be2=0.1 * jax.random.normal(k[7], (channels,), jnp.float32),
        ))
    return params


def respath_reference(x, params_list):
    """Pure-JAX reference (XLA convs, NCHW) for correctness checking."""
    dn = ("NCHW", "OIHW", "NCHW")
    for p in params_list:
        sc = jax.lax.conv_general_dilated(
            x, p["w1"][:, :, None, None], (1, 1), "SAME",
            dimension_numbers=dn) + p["b1"][None, :, None, None]
        y = jax.lax.conv_general_dilated(
            x, p["w3"], (1, 1), "SAME",
            dimension_numbers=dn) + p["b3"][None, :, None, None]
        y = jax.nn.relu(y)
        mu = y.mean((0, 2, 3), keepdims=True)
        var = ((y - mu) ** 2).mean((0, 2, 3), keepdims=True)
        y = (y - mu) * jax.lax.rsqrt(var + EPS) * p["g1"][None, :, None, None] \
            + p["be1"][None, :, None, None]
        y = jax.nn.relu(sc + y)
        mu = y.mean((0, 2, 3), keepdims=True)
        var = ((y - mu) ** 2).mean((0, 2, 3), keepdims=True)
        x = (y - mu) * jax.lax.rsqrt(var + EPS) * p["g2"][None, :, None, None] \
            + p["be2"][None, :, None, None]
    return x


if __name__ == "__main__":
    key = jax.random.PRNGKey(0)
    N, C, H, W = 2, 4, 16, 16        # small shapes consistent with Conv2d(C, C, ...)
    length = 3

    x = jax.random.normal(jax.random.fold_in(key, 1000), (N, C, H, W), jnp.float32)
    params = init_params(key, C, length)

    out = jax.block_until_ready(respath_forward(x, params))
    assert out.shape == (N, C, H, W) and out.dtype == jnp.float32

    ref = respath_reference(x, params)
    if not jnp.allclose(out, ref, atol=1e-3, rtol=1e-3):
        err = float(jnp.max(jnp.abs(out - ref)))
        raise AssertionError(f"Pallas ResPath does not match JAX reference (max err {err})")

    print("KERNEL_OK")
</pallas_src>

<mosaic_0001>
module attributes {stable_mosaic.version = 11 : i64} {
  func.func @kernel(%arg0: memref<8x512xf32, #tpu.memory_space<vmem>>, %arg1: memref<3x8x8xf32, #tpu.memory_space<vmem>>, %arg2: memref<3x8x72xf32, #tpu.memory_space<vmem>>, %arg3: memref<3x6x8x1xf32, #tpu.memory_space<vmem>>, %arg4: memref<72x512xf32, #tpu.memory_space<vmem>>, %arg5: memref<8x512xf32, #tpu.memory_space<vmem>>) attributes {dimension_semantics = [], scalar_prefetch = 0 : i64, scratch_operands = 0 : i64, tpu.core_type = #tpu.core_type<tc>} {
    %c0 = arith.constant 0 : index
    %c0_0 = arith.constant 0 : index
    %0 = vector.load %arg0[%c0, %c0_0] : memref<8x512xf32, #tpu.memory_space<vmem>>, vector<8x512xf32>
    %c0_1 = arith.constant 0 : index
    %c0_2 = arith.constant 0 : index
    %1 = vector.load %arg4[%c0_1, %c0_2] : memref<72x512xf32, #tpu.memory_space<vmem>>, vector<72x512xf32>
    %c0_3 = arith.constant 0 : index
    %c0_4 = arith.constant 0 : index
    %c0_5 = arith.constant 0 : index
    %2 = vector.load %arg1[%c0_3, %c0_4, %c0_5] : memref<3x8x8xf32, #tpu.memory_space<vmem>>, vector<1x8x8xf32>
    %3 = vector.shape_cast %2 : vector<1x8x8xf32> to vector<8x8xf32>
    %cst = arith.constant dense<0.000000e+00> : vector<8x512xf32>
    %4 = tpu.matmul %3, %0, %cst {dimension_numbers = #tpu.dot_dimension_numbers<[1], [0], [0], [1], [0, 0, 1, 1], [], []>} : vector<8x8xf32>, vector<8x512xf32>, vector<8x512xf32> -> vector<8x512xf32>
    %c0_6 = arith.constant 0 : index
    %c0_7 = arith.constant 0 : index
    %c0_8 = arith.constant 0 : index
    %c0_9 = arith.constant 0 : index
    %5 = vector.load %arg3[%c0_6, %c0_7, %c0_8, %c0_9] : memref<3x6x8x1xf32, #tpu.memory_space<vmem>>, vector<1x1x8x1xf32>
    %6 = vector.shape_cast %5 : vector<1x1x8x1xf32> to vector<8x1xf32>
    %7 = vector.broadcast %6 : vector<8x1xf32> to vector<8x512xf32>
    %8 = arith.addf %4, %7 : vector<8x512xf32>
    %c17_i32 = arith.constant 17 : i32
    %9 = tpu.dynamic_rotate %0 by %c17_i32 dim 1 : vector<8x512xf32>, i32 -> vector<8x512xf32>
    %c16_i32 = arith.constant 16 : i32
    %10 = tpu.dynamic_rotate %0 by %c16_i32 dim 1 : vector<8x512xf32>, i32 -> vector<8x512xf32>
    %c15_i32 = arith.constant 15 : i32
    %11 = tpu.dynamic_rotate %0 by %c15_i32 dim 1 : vector<8x512xf32>, i32 -> vector<8x512xf32>
    %c1_i32 = arith.constant 1 : i32
    %12 = tpu.dynamic_rotate %0 by %c1_i32 dim 1 : vector<8x512xf32>, i32 -> vector<8x512xf32>
    %c511_i32 = arith.constant 511 : i32
    %13 = tpu.dynamic_rotate %0 by %c511_i32 dim 1 : vector<8x512xf32>, i32 -> vector<8x512xf32>
    %c497_i32 = arith.constant 497 : i32
    %14 = tpu.dynamic_rotate %0 by %c497_i32 dim 1 : vector<8x512xf32>, i32 -> vector<8x512xf32>
    %c496_i32 = arith.constant 496 : i32
    %15 = tpu.dynamic_rotate %0 by %c496_i32 dim 1 : vector<8x512xf32>, i32 -> vector<8x512xf32>
    %c495_i32 = arith.constant 495 : i32
    %16 = tpu.dynamic_rotate %0 by %c495_i32 dim 1 : vector<8x512xf32>, i32 -> vector<8x512xf32>
    %17 = tpu.concatenate %9, %10, %11, %12, %0, %13, %14, %15, %16 in 0 : vector<8x512xf32>, vector<8x512xf32>, vector<8x512xf32>, vector<8x512xf32>, vector<8x512xf32>, vector<8x512xf32>, vector<8x512xf32>, vector<8x512xf32>, vector<8x512xf32> -> vector<72x512xf32>
    %18 = arith.mulf %17, %1 : vector<72x512xf32>
    %c0_10 = arith.constant 0 : index
    %c0_11 = arith.constant 0 : index
    %c0_12 = arith.constant 0 : index
    %19 = vector.load %arg2[%c0_10, %c0_11, %c0_12] : memref<3x8x72xf32, #tpu.memory_space<vmem>>, vector<1x8x72xf32>
    %20 = vector.shape_cast %19 : vector<1x8x72xf32> to vector<8x72xf32>
    %cst_13 = arith.constant dense<0.000000e+00> : vector<8x512xf32>
    %21 = tpu.matmul %20, %18, %cst_13 {dimension_numbers = #tpu.dot_dimension_numbers<[1], [0], [0], [1], [0, 0, 1, 1], [], []>} : vector<8x72xf32>, vector<72x512xf32>, vector<8x512xf32> -> vector<8x512xf32>
    %c0_14 = arith.constant 0 : index
    %c1 = arith.constant 1 : index
    %c0_15 = arith.constant 0 : index
    %c0_16 = arith.constant 0 : index
    %22 = vector.load %arg3[%c0_14, %c1, %c0_15, %c0_16] : memref<3x6x8x1xf32, #tpu.memory_space<vmem>>, vector<1x1x8x1xf32>
    %23 = vector.shape_cast %22 : vector<1x1x8x1xf32> to vector<8x1xf32>
    %24 = vector.broadcast %23 : vector<8x1xf32> to vector<8x512xf32>
    %25 = arith.addf %21, %24 : vector<8x512xf32>
    %cst_17 = arith.constant 0.000000e+00 : f32
    %26 = vector.broadcast %cst_17 : f32 to vector<8x512xf32>
    %27 = arith.maximumf %25, %26 : vector<8x512xf32>
    %cst_18 = arith.constant dense<0.000000e+00> : vector<8xf32>
    %28 = vector.multi_reduction <add>, %27, %cst_18 [1] : vector<8x512xf32> to vector<8xf32>
    %29 = vector.shape_cast %28 : vector<8xf32> to vector<8x1xf32>
    %cst_19 = arith.constant 5.120000e+02 : f32
    %30 = vector.broadcast %cst_19 : f32 to vector<8x1xf32>
    %31 = arith.divf %29, %30 : vector<8x1xf32>
    %32 = vector.broadcast %31 : vector<8x1xf32> to vector<8x512xf32>
    %33 = arith.subf %27, %32 : vector<8x512xf32>
    %34 = arith.mulf %33, %33 : vector<8x512xf32>
    %cst_20 = arith.constant dense<0.000000e+00> : vector<8xf32>
    %35 = vector.multi_reduction <add>, %34, %cst_20 [1] : vector<8x512xf32> to vector<8xf32>
    %36 = vector.shape_cast %35 : vector<8xf32> to vector<8x1xf32>
    %cst_21 = arith.constant 5.120000e+02 : f32
    %37 = vector.broadcast %cst_21 : f32 to vector<8x1xf32>
    %38 = arith.divf %36, %37 : vector<8x1xf32>
    %c0_22 = arith.constant 0 : index
    %c2 = arith.constant 2 : index
    %c0_23 = arith.constant 0 : index
    %c0_24 = arith.constant 0 : index
    %39 = vector.load %arg3[%c0_22, %c2, %c0_23, %c0_24] : memref<3x6x8x1xf32, #tpu.memory_space<vmem>>, vector<1x1x8x1xf32>
    %40 = vector.shape_cast %39 : vector<1x1x8x1xf32> to vector<8x1xf32>
    %cst_25 = arith.constant 9.99999974E-6 : f32
    %41 = vector.broadcast %cst_25 : f32 to vector<8x1xf32>
    %42 = arith.addf %38, %41 : vector<8x1xf32>
    %43 = math.rsqrt %42 : vector<8x1xf32>
    %44 = arith.mulf %40, %43 : vector<8x1xf32>
    %45 = vector.broadcast %44 : vector<8x1xf32> to vector<8x512xf32>
    %46 = arith.mulf %27, %45 : vector<8x512xf32>
    %c0_26 = arith.constant 0 : index
    %c3 = arith.constant 3 : index
    %c0_27 = arith.constant 0 : index
    %c0_28 = arith.constant 0 : index
    %47 = vector.load %arg3[%c0_26, %c3, %c0_27, %c0_28] : memref<3x6x8x1xf32, #tpu.memory_space<vmem>>, vector<1x1x8x1xf32>
    %48 = vector.shape_cast %47 : vector<1x1x8x1xf32> to vector<8x1xf32>
    %49 = arith.mulf %31, %44 : vector<8x1xf32>
    %50 = arith.subf %48, %49 : vector<8x1xf32>
    %51 = vector.broadcast %50 : vector<8x1xf32> to vector<8x512xf32>
    %52 = arith.addf %46, %51 : vector<8x512xf32>
    %53 = arith.addf %8, %52 : vector<8x512xf32>
    %cst_29 = arith.constant 0.000000e+00 : f32
    %54 = vector.broadcast %cst_29 : f32 to vector<8x512xf32>
    %55 = arith.maximumf %53, %54 : vector<8x512xf32>
    %cst_30 = arith.constant dense<0.000000e+00> : vector<8xf32>
    %56 = vector.multi_reduction <add>, %55, %cst_30 [1] : vector<8x512xf32> to vector<8xf32>
    %57 = vector.shape_cast %56 : vector<8xf32> to vector<8x1xf32>
    %cst_31 = arith.constant 5.120000e+02 : f32
    %58 = vector.broadcast %cst_31 : f32 to vector<8x1xf32>
    %59 = arith.divf %57, %58 : vector<8x1xf32>
    %60 = vector.broadcast %59 : vector<8x1xf32> to vector<8x512xf32>
    %61 = arith.subf %55, %60 : vector<8x512xf32>
    %62 = arith.mulf %61, %61 : vector<8x512xf32>
    %cst_32 = arith.constant dense<0.000000e+00> : vector<8xf32>
    %63 = vector.multi_reduction <add>, %62, %cst_32 [1] : vector<8x512xf32> to vector<8xf32>
    %64 = vector.shape_cast %63 : vector<8xf32> to vector<8x1xf32>
    %cst_33 = arith.constant 5.120000e+02 : f32
    %65 = vector.broadcast %cst_33 : f32 to vector<8x1xf32>
    %66 = arith.divf %64, %65 : vector<8x1xf32>
    %c0_34 = arith.constant 0 : index
    %c4 = arith.constant 4 : index
    %c0_35 = arith.constant 0 : index
    %c0_36 = arith.constant 0 : index
    %67 = vector.load %arg3[%c0_34, %c4, %c0_35, %c0_36] : memref<3x6x8x1xf32, #tpu.memory_space<vmem>>, vector<1x1x8x1xf32>
    %68 = vector.shape_cast %67 : vector<1x1x8x1xf32> to vector<8x1xf32>
    %cst_37 = arith.constant 9.99999974E-6 : f32
    %69 = vector.broadcast %cst_37 : f32 to vector<8x1xf32>
    %70 = arith.addf %66, %69 : vector<8x1xf32>
    %71 = math.rsqrt %70 : vector<8x1xf32>
    %72 = arith.mulf %68, %71 : vector<8x1xf32>
    %73 = vector.broadcast %72 : vector<8x1xf32> to vector<8x512xf32>
    %74 = arith.mulf %55, %73 : vector<8x512xf32>
    %c0_38 = arith.constant 0 : index
    %c5 = arith.constant 5 : index
    %c0_39 = arith.constant 0 : index
    %c0_40 = arith.constant 0 : index
    %75 = vector.load %arg3[%c0_38, %c5, %c0_39, %c0_40] : memref<3x6x8x1xf32, #tpu.memory_space<vmem>>, vector<1x1x8x1xf32>
    %76 = vector.shape_cast %75 : vector<1x1x8x1xf32> to vector<8x1xf32>
    %77 = arith.mulf %59, %72 : vector<8x1xf32>
    %78 = arith.subf %76, %77 : vector<8x1xf32>
    %79 = vector.broadcast %78 : vector<8x1xf32> to vector<8x512xf32>
    %80 = arith.addf %74, %79 : vector<8x512xf32>
    %c1_41 = arith.constant 1 : index
    %c0_42 = arith.constant 0 : index
    %c0_43 = arith.constant 0 : index
    %81 = vector.load %arg1[%c1_41, %c0_42, %c0_43] : memref<3x8x8xf32, #tpu.memory_space<vmem>>, vector<1x8x8xf32>
    %82 = vector.shape_cast %81 : vector<1x8x8xf32> to vector<8x8xf32>
    %cst_44 = arith.constant dense<0.000000e+00> : vector<8x512xf32>
    %83 = tpu.matmul %82, %80, %cst_44 {dimension_numbers = #tpu.dot_dimension_numbers<[1], [0], [0], [1], [0, 0, 1, 1], [], []>} : vector<8x8xf32>, vector<8x512xf32>, vector<8x512xf32> -> vector<8x512xf32>
    %c1_45 = arith.constant 1 : index
    %c0_46 = arith.constant 0 : index
    %c0_47 = arith.constant 0 : index
    %c0_48 = arith.constant 0 : index
    %84 = vector.load %arg3[%c1_45, %c0_46, %c0_47, %c0_48] : memref<3x6x8x1xf32, #tpu.memory_space<vmem>>, vector<1x1x8x1xf32>
    %85 = vector.shape_cast %84 : vector<1x1x8x1xf32> to vector<8x1xf32>
    %86 = vector.broadcast %85 : vector<8x1xf32> to vector<8x512xf32>
    %87 = arith.addf %83, %86 : vector<8x512xf32>
    %c17_i32_49 = arith.constant 17 : i32
    %88 = tpu.dynamic_rotate %80 by %c17_i32_49 dim 1 : vector<8x512xf32>, i32 -> vector<8x512xf32>
    %c16_i32_50 = arith.constant 16 : i32
    %89 = tpu.dynamic_rotate %80 by %c16_i32_50 dim 1 : vector<8x512xf32>, i32 -> vector<8x512xf32>
    %c15_i32_51 = arith.constant 15 : i32
    %90 = tpu.dynamic_rotate %80 by %c15_i32_51 dim 1 : vector<8x512xf32>, i32 -> vector<8x512xf32>
    %c1_i32_52 = arith.constant 1 : i32
    %91 = tpu.dynamic_rotate %80 by %c1_i32_52 dim 1 : vector<8x512xf32>, i32 -> vector<8x512xf32>
    %c511_i32_53 = arith.constant 511 : i32
    %92 = tpu.dynamic_rotate %80 by %c511_i32_53 dim 1 : vector<8x512xf32>, i32 -> vector<8x512xf32>
    %c497_i32_54 = arith.constant 497 : i32
    %93 = tpu.dynamic_rotate %80 by %c497_i32_54 dim 1 : vector<8x512xf32>, i32 -> vector<8x512xf32>
    %c496_i32_55 = arith.constant 496 : i32
    %94 = tpu.dynamic_rotate %80 by %c496_i32_55 dim 1 : vector<8x512xf32>, i32 -> vector<8x512xf32>
    %c495_i32_56 = arith.constant 495 : i32
    %95 = tpu.dynamic_rotate %80 by %c495_i32_56 dim 1 : vector<8x512xf32>, i32 -> vector<8x512xf32>
    %96 = tpu.concatenate %88, %89, %90, %91, %80, %92, %93, %94, %95 in 0 : vector<8x512xf32>, vector<8x512xf32>, vector<8x512xf32>, vector<8x512xf32>, vector<8x512xf32>, vector<8x512xf32>, vector<8x512xf32>, vector<8x512xf32>, vector<8x512xf32> -> vector<72x512xf32>
    %97 = arith.mulf %96, %1 : vector<72x512xf32>
    %c1_57 = arith.constant 1 : index
    %c0_58 = arith.constant 0 : index
    %c0_59 = arith.constant 0 : index
    %98 = vector.load %arg2[%c1_57, %c0_58, %c0_59] : memref<3x8x72xf32, #tpu.memory_space<vmem>>, vector<1x8x72xf32>
    %99 = vector.shape_cast %98 : vector<1x8x72xf32> to vector<8x72xf32>
    %cst_60 = arith.constant dense<0.000000e+00> : vector<8x512xf32>
    %100 = tpu.matmul %99, %97, %cst_60 {dimension_numbers = #tpu.dot_dimension_numbers<[1], [0], [0], [1], [0, 0, 1, 1], [], []>} : vector<8x72xf32>, vector<72x512xf32>, vector<8x512xf32> -> vector<8x512xf32>
    %c1_61 = arith.constant 1 : index
    %c1_62 = arith.constant 1 : index
    %c0_63 = arith.constant 0 : index
    %c0_64 = arith.constant 0 : index
    %101 = vector.load %arg3[%c1_61, %c1_62, %c0_63, %c0_64] : memref<3x6x8x1xf32, #tpu.memory_space<vmem>>, vector<1x1x8x1xf32>
    %102 = vector.shape_cast %101 : vector<1x1x8x1xf32> to vector<8x1xf32>
    %103 = vector.broadcast %102 : vector<8x1xf32> to vector<8x512xf32>
    %104 = arith.addf %100, %103 : vector<8x512xf32>
    %cst_65 = arith.constant 0.000000e+00 : f32
    %105 = vector.broadcast %cst_65 : f32 to vector<8x512xf32>
    %106 = arith.maximumf %104, %105 : vector<8x512xf32>
    %cst_66 = arith.constant dense<0.000000e+00> : vector<8xf32>
    %107 = vector.multi_reduction <add>, %106, %cst_66 [1] : vector<8x512xf32> to vector<8xf32>
    %108 = vector.shape_cast %107 : vector<8xf32> to vector<8x1xf32>
    %cst_67 = arith.constant 5.120000e+02 : f32
    %109 = vector.broadcast %cst_67 : f32 to vector<8x1xf32>
    %110 = arith.divf %108, %109 : vector<8x1xf32>
    %111 = vector.broadcast %110 : vector<8x1xf32> to vector<8x512xf32>
    %112 = arith.subf %106, %111 : vector<8x512xf32>
    %113 = arith.mulf %112, %112 : vector<8x512xf32>
    %cst_68 = arith.constant dense<0.000000e+00> : vector<8xf32>
    %114 = vector.multi_reduction <add>, %113, %cst_68 [1] : vector<8x512xf32> to vector<8xf32>
    %115 = vector.shape_cast %114 : vector<8xf32> to vector<8x1xf32>
    %cst_69 = arith.constant 5.120000e+02 : f32
    %116 = vector.broadcast %cst_69 : f32 to vector<8x1xf32>
    %117 = arith.divf %115, %116 : vector<8x1xf32>
    %c1_70 = arith.constant 1 : index
    %c2_71 = arith.constant 2 : index
    %c0_72 = arith.constant 0 : index
    %c0_73 = arith.constant 0 : index
    %118 = vector.load %arg3[%c1_70, %c2_71, %c0_72, %c0_73] : memref<3x6x8x1xf32, #tpu.memory_space<vmem>>, vector<1x1x8x1xf32>
    %119 = vector.shape_cast %118 : vector<1x1x8x1xf32> to vector<8x1xf32>
    %cst_74 = arith.constant 9.99999974E-6 : f32
    %120 = vector.broadcast %cst_74 : f32 to vector<8x1xf32>
    %121 = arith.addf %117, %120 : vector<8x1xf32>
    %122 = math.rsqrt %121 : vector<8x1xf32>
    %123 = arith.mulf %119, %122 : vector<8x1xf32>
    %124 = vector.broadcast %123 : vector<8x1xf32> to vector<8x512xf32>
    %125 = arith.mulf %106, %124 : vector<8x512xf32>
    %c1_75 = arith.constant 1 : index
    %c3_76 = arith.constant 3 : index
    %c0_77 = arith.constant 0 : index
    %c0_78 = arith.constant 0 : index
    %126 = vector.load %arg3[%c1_75, %c3_76, %c0_77, %c0_78] : memref<3x6x8x1xf32, #tpu.memory_space<vmem>>, vector<1x1x8x1xf32>
    %127 = vector.shape_cast %126 : vector<1x1x8x1xf32> to vector<8x1xf32>
    %128 = arith.mulf %110, %123 : vector<8x1xf32>
    %129 = arith.subf %127, %128 : vector<8x1xf32>
    %130 = vector.broadcast %129 : vector<8x1xf32> to vector<8x512xf32>
    %131 = arith.addf %125, %130 : vector<8x512xf32>
    %132 = arith.addf %87, %131 : vector<8x512xf32>
    %cst_79 = arith.constant 0.000000e+00 : f32
    %133 = vector.broadcast %cst_79 : f32 to vector<8x512xf32>
    %134 = arith.maximumf %132, %133 : vector<8x512xf32>
    %cst_80 = arith.constant dense<0.000000e+00> : vector<8xf32>
    %135 = vector.multi_reduction <add>, %134, %cst_80 [1] : vector<8x512xf32> to vector<8xf32>
    %136 = vector.shape_cast %135 : vector<8xf32> to vector<8x1xf32>
    %cst_81 = arith.constant 5.120000e+02 : f32
    %137 = vector.broadcast %cst_81 : f32 to vector<8x1xf32>
    %138 = arith.divf %136, %137 : vector<8x1xf32>
    %139 = vector.broadcast %138 : vector<8x1xf32> to vector<8x512xf32>
    %140 = arith.subf %134, %139 : vector<8x512xf32>
    %141 = arith.mulf %140, %140 : vector<8x512xf32>
    %cst_82 = arith.constant dense<0.000000e+00> : vector<8xf32>
    %142 = vector.multi_reduction <add>, %141, %cst_82 [1] : vector<8x512xf32> to vector<8xf32>
    %143 = vector.shape_cast %142 : vector<8xf32> to vector<8x1xf32>
    %cst_83 = arith.constant 5.120000e+02 : f32
    %144 = vector.broadcast %cst_83 : f32 to vector<8x1xf32>
    %145 = arith.divf %143, %144 : vector<8x1xf32>
    %c1_84 = arith.constant 1 : index
    %c4_85 = arith.constant 4 : index
    %c0_86 = arith.constant 0 : index
    %c0_87 = arith.constant 0 : index
    %146 = vector.load %arg3[%c1_84, %c4_85, %c0_86, %c0_87] : memref<3x6x8x1xf32, #tpu.memory_space<vmem>>, vector<1x1x8x1xf32>
    %147 = vector.shape_cast %146 : vector<1x1x8x1xf32> to vector<8x1xf32>
    %cst_88 = arith.constant 9.99999974E-6 : f32
    %148 = vector.broadcast %cst_88 : f32 to vector<8x1xf32>
    %149 = arith.addf %145, %148 : vector<8x1xf32>
    %150 = math.rsqrt %149 : vector<8x1xf32>
    %151 = arith.mulf %147, %150 : vector<8x1xf32>
    %152 = vector.broadcast %151 : vector<8x1xf32> to vector<8x512xf32>
    %153 = arith.mulf %134, %152 : vector<8x512xf32>
    %c1_89 = arith.constant 1 : index
    %c5_90 = arith.constant 5 : index
    %c0_91 = arith.constant 0 : index
    %c0_92 = arith.constant 0 : index
    %154 = vector.load %arg3[%c1_89, %c5_90, %c0_91, %c0_92] : memref<3x6x8x1xf32, #tpu.memory_space<vmem>>, vector<1x1x8x1xf32>
    %155 = vector.shape_cast %154 : vector<1x1x8x1xf32> to vector<8x1xf32>
    %156 = arith.mulf %138, %151 : vector<8x1xf32>
    %157 = arith.subf %155, %156 : vector<8x1xf32>
    %158 = vector.broadcast %157 : vector<8x1xf32> to vector<8x512xf32>
    %159 = arith.addf %153, %158 : vector<8x512xf32>
    %c2_93 = arith.constant 2 : index
    %c0_94 = arith.constant 0 : index
    %c0_95 = arith.constant 0 : index
    %160 = vector.load %arg1[%c2_93, %c0_94, %c0_95] : memref<3x8x8xf32, #tpu.memory_space<vmem>>, vector<1x8x8xf32>
    %161 = vector.shape_cast %160 : vector<1x8x8xf32> to vector<8x8xf32>
    %cst_96 = arith.constant dense<0.000000e+00> : vector<8x512xf32>
    %162 = tpu.matmul %161, %159, %cst_96 {dimension_numbers = #tpu.dot_dimension_numbers<[1], [0], [0], [1], [0, 0, 1, 1], [], []>} : vector<8x8xf32>, vector<8x512xf32>, vector<8x512xf32> -> vector<8x512xf32>
    %c2_97 = arith.constant 2 : index
    %c0_98 = arith.constant 0 : index
    %c0_99 = arith.constant 0 : index
    %c0_100 = arith.constant 0 : index
    %163 = vector.load %arg3[%c2_97, %c0_98, %c0_99, %c0_100] : memref<3x6x8x1xf32, #tpu.memory_space<vmem>>, vector<1x1x8x1xf32>
    %164 = vector.shape_cast %163 : vector<1x1x8x1xf32> to vector<8x1xf32>
    %165 = vector.broadcast %164 : vector<8x1xf32> to vector<8x512xf32>
    %166 = arith.addf %162, %165 : vector<8x512xf32>
    %c17_i32_101 = arith.constant 17 : i32
    %167 = tpu.dynamic_rotate %159 by %c17_i32_101 dim 1 : vector<8x512xf32>, i32 -> vector<8x512xf32>
    %c16_i32_102 = arith.constant 16 : i32
    %168 = tpu.dynamic_rotate %159 by %c16_i32_102 dim 1 : vector<8x512xf32>, i32 -> vector<8x512xf32>
    %c15_i32_103 = arith.constant 15 : i32
    %169 = tpu.dynamic_rotate %159 by %c15_i32_103 dim 1 : vector<8x512xf32>, i32 -> vector<8x512xf32>
    %c1_i32_104 = arith.constant 1 : i32
    %170 = tpu.dynamic_rotate %159 by %c1_i32_104 dim 1 : vector<8x512xf32>, i32 -> vector<8x512xf32>
    %c511_i32_105 = arith.constant 511 : i32
    %171 = tpu.dynamic_rotate %159 by %c511_i32_105 dim 1 : vector<8x512xf32>, i32 -> vector<8x512xf32>
    %c497_i32_106 = arith.constant 497 : i32
    %172 = tpu.dynamic_rotate %159 by %c497_i32_106 dim 1 : vector<8x512xf32>, i32 -> vector<8x512xf32>
    %c496_i32_107 = arith.constant 496 : i32
    %173 = tpu.dynamic_rotate %159 by %c496_i32_107 dim 1 : vector<8x512xf32>, i32 -> vector<8x512xf32>
    %c495_i32_108 = arith.constant 495 : i32
    %174 = tpu.dynamic_rotate %159 by %c495_i32_108 dim 1 : vector<8x512xf32>, i32 -> vector<8x512xf32>
    %175 = tpu.concatenate %167, %168, %169, %170, %159, %171, %172, %173, %174 in 0 : vector<8x512xf32>, vector<8x512xf32>, vector<8x512xf32>, vector<8x512xf32>, vector<8x512xf32>, vector<8x512xf32>, vector<8x512xf32>, vector<8x512xf32>, vector<8x512xf32> -> vector<72x512xf32>
    %176 = arith.mulf %175, %1 : vector<72x512xf32>
    %c2_109 = arith.constant 2 : index
    %c0_110 = arith.constant 0 : index
    %c0_111 = arith.constant 0 : index
    %177 = vector.load %arg2[%c2_109, %c0_110, %c0_111] : memref<3x8x72xf32, #tpu.memory_space<vmem>>, vector<1x8x72xf32>
    %178 = vector.shape_cast %177 : vector<1x8x72xf32> to vector<8x72xf32>
    %cst_112 = arith.constant dense<0.000000e+00> : vector<8x512xf32>
    %179 = tpu.matmul %178, %176, %cst_112 {dimension_numbers = #tpu.dot_dimension_numbers<[1], [0], [0], [1], [0, 0, 1, 1], [], []>} : vector<8x72xf32>, vector<72x512xf32>, vector<8x512xf32> -> vector<8x512xf32>
    %c2_113 = arith.constant 2 : index
    %c1_114 = arith.constant 1 : index
    %c0_115 = arith.constant 0 : index
    %c0_116 = arith.constant 0 : index
    %180 = vector.load %arg3[%c2_113, %c1_114, %c0_115, %c0_116] : memref<3x6x8x1xf32, #tpu.memory_space<vmem>>, vector<1x1x8x1xf32>
    %181 = vector.shape_cast %180 : vector<1x1x8x1xf32> to vector<8x1xf32>
    %182 = vector.broadcast %181 : vector<8x1xf32> to vector<8x512xf32>
    %183 = arith.addf %179, %182 : vector<8x512xf32>
    %cst_117 = arith.constant 0.000000e+00 : f32
    %184 = vector.broadcast %cst_117 : f32 to vector<8x512xf32>
    %185 = arith.maximumf %183, %184 : vector<8x512xf32>
    %cst_118 = arith.constant dense<0.000000e+00> : vector<8xf32>
    %186 = vector.multi_reduction <add>, %185, %cst_118 [1] : vector<8x512xf32> to vector<8xf32>
    %187 = vector.shape_cast %186 : vector<8xf32> to vector<8x1xf32>
    %cst_119 = arith.constant 5.120000e+02 : f32
    %188 = vector.broadcast %cst_119 : f32 to vector<8x1xf32>
    %189 = arith.divf %187, %188 : vector<8x1xf32>
    %190 = vector.broadcast %189 : vector<8x1xf32> to vector<8x512xf32>
    %191 = arith.subf %185, %190 : vector<8x512xf32>
    %192 = arith.mulf %191, %191 : vector<8x512xf32>
    %cst_120 = arith.constant dense<0.000000e+00> : vector<8xf32>
    %193 = vector.multi_reduction <add>, %192, %cst_120 [1] : vector<8x512xf32> to vector<8xf32>
    %194 = vector.shape_cast %193 : vector<8xf32> to vector<8x1xf32>
    %cst_121 = arith.constant 5.120000e+02 : f32
    %195 = vector.broadcast %cst_121 : f32 to vector<8x1xf32>
    %196 = arith.divf %194, %195 : vector<8x1xf32>
    %c2_122 = arith.constant 2 : index
    %c2_123 = arith.constant 2 : index
    %c0_124 = arith.constant 0 : index
    %c0_125 = arith.constant 0 : index
    %197 = vector.load %arg3[%c2_122, %c2_123, %c0_124, %c0_125] : memref<3x6x8x1xf32, #tpu.memory_space<vmem>>, vector<1x1x8x1xf32>
    %198 = vector.shape_cast %197 : vector<1x1x8x1xf32> to vector<8x1xf32>
    %cst_126 = arith.constant 9.99999974E-6 : f32
    %199 = vector.broadcast %cst_126 : f32 to vector<8x1xf32>
    %200 = arith.addf %196, %199 : vector<8x1xf32>
    %201 = math.rsqrt %200 : vector<8x1xf32>
    %202 = arith.mulf %198, %201 : vector<8x1xf32>
    %203 = vector.broadcast %202 : vector<8x1xf32> to vector<8x512xf32>
    %204 = arith.mulf %185, %203 : vector<8x512xf32>
    %c2_127 = arith.constant 2 : index
    %c3_128 = arith.constant 3 : index
    %c0_129 = arith.constant 0 : index
    %c0_130 = arith.constant 0 : index
    %205 = vector.load %arg3[%c2_127, %c3_128, %c0_129, %c0_130] : memref<3x6x8x1xf32, #tpu.memory_space<vmem>>, vector<1x1x8x1xf32>
    %206 = vector.shape_cast %205 : vector<1x1x8x1xf32> to vector<8x1xf32>
    %207 = arith.mulf %189, %202 : vector<8x1xf32>
    %208 = arith.subf %206, %207 : vector<8x1xf32>
    %209 = vector.broadcast %208 : vector<8x1xf32> to vector<8x512xf32>
    %210 = arith.addf %204, %209 : vector<8x512xf32>
    %211 = arith.addf %166, %210 : vector<8x512xf32>
    %cst_131 = arith.constant 0.000000e+00 : f32
    %212 = vector.broadcast %cst_131 : f32 to vector<8x512xf32>
    %213 = arith.maximumf %211, %212 : vector<8x512xf32>
    %cst_132 = arith.constant dense<0.000000e+00> : vector<8xf32>
    %214 = vector.multi_reduction <add>, %213, %cst_132 [1] : vector<8x512xf32> to vector<8xf32>
    %215 = vector.shape_cast %214 : vector<8xf32> to vector<8x1xf32>
    %cst_133 = arith.constant 5.120000e+02 : f32
    %216 = vector.broadcast %cst_133 : f32 to vector<8x1xf32>
    %217 = arith.divf %215, %216 : vector<8x1xf32>
    %218 = vector.broadcast %217 : vector<8x1xf32> to vector<8x512xf32>
    %219 = arith.subf %213, %218 : vector<8x512xf32>
    %220 = arith.mulf %219, %219 : vector<8x512xf32>
    %cst_134 = arith.constant dense<0.000000e+00> : vector<8xf32>
    %221 = vector.multi_reduction <add>, %220, %cst_134 [1] : vector<8x512xf32> to vector<8xf32>
    %222 = vector.shape_cast %221 : vector<8xf32> to vector<8x1xf32>
    %cst_135 = arith.constant 5.120000e+02 : f32
    %223 = vector.broadcast %cst_135 : f32 to vector<8x1xf32>
    %224 = arith.divf %222, %223 : vector<8x1xf32>
    %c2_136 = arith.constant 2 : index
    %c4_137 = arith.constant 4 : index
    %c0_138 = arith.constant 0 : index
    %c0_139 = arith.constant 0 : index
    %225 = vector.load %arg3[%c2_136, %c4_137, %c0_138, %c0_139] : memref<3x6x8x1xf32, #tpu.memory_space<vmem>>, vector<1x1x8x1xf32>
    %226 = vector.shape_cast %225 : vector<1x1x8x1xf32> to vector<8x1xf32>
    %cst_140 = arith.constant 9.99999974E-6 : f32
    %227 = vector.broadcast %cst_140 : f32 to vector<8x1xf32>
    %228 = arith.addf %224, %227 : vector<8x1xf32>
    %229 = math.rsqrt %228 : vector<8x1xf32>
    %230 = arith.mulf %226, %229 : vector<8x1xf32>
    %231 = vector.broadcast %230 : vector<8x1xf32> to vector<8x512xf32>
    %232 = arith.mulf %213, %231 : vector<8x512xf32>
    %c2_141 = arith.constant 2 : index
    %c5_142 = arith.constant 5 : index
    %c0_143 = arith.constant 0 : index
    %c0_144 = arith.constant 0 : index
    %233 = vector.load %arg3[%c2_141, %c5_142, %c0_143, %c0_144] : memref<3x6x8x1xf32, #tpu.memory_space<vmem>>, vector<1x1x8x1xf32>
    %234 = vector.shape_cast %233 : vector<1x1x8x1xf32> to vector<8x1xf32>
    %235 = arith.mulf %217, %230 : vector<8x1xf32>
    %236 = arith.subf %234, %235 : vector<8x1xf32>
    %237 = vector.broadcast %236 : vector<8x1xf32> to vector<8x512xf32>
    %238 = arith.addf %232, %237 : vector<8x512xf32>
    %c0_145 = arith.constant 0 : index
    %c0_146 = arith.constant 0 : index
    %239 = vector.load %arg5[%c0_145, %c0_146] : memref<8x512xf32, #tpu.memory_space<vmem>>, vector<8x512xf32>
    tpu.vector_store %arg5[%c0_145, %c0_146], %238 {strides = array<i32>} : memref<8x512xf32, #tpu.memory_space<vmem>>, vector<8x512xf32>,
    return
  }
}

</mosaic_0001>

<bundles_post_ra>
// kernel: tpu_custom_call.1
= control target key start
LH: loop header
LB: loop body
LE: loop exit
PB: predicated region body
PF: predicated region fallthrough
CT: control target
= control target key end

     0   :  { %10 = vsyncpa [#allocation3], 0  ;;  %s2627_s0 = inlined_call_operand.vmem [shape: f32[8,512], index: 0, kind: input, shape index: {}]   ;;  %s2628_s1 = inlined_call_operand.vmem [shape: f32[3,8,8], index: 1, kind: input, shape index: {}]   ;;  %s2629_s2 = inlined_call_operand.vmem [shape: f32[3,8,72], index: 2, kind: input, shape index: {}]   ;;  %s2630_s3 = inlined_call_operand.vmem [shape: f32[3,6,8,1], index: 3, kind: input, shape index: {}]   ;;  %s2631_s4 = inlined_call_operand.hbm [shape: f32[72,512], index: 4, kind: input, shape index: {}]   ;;  %s2632_s5 = inlined_call_operand.hbm [shape: f32[8,512], index: 5, kind: output, shape index: {}]  }
   0x1   :  { %11 = vsyncpa [#allocation4], 0  ;;  %s1883_s18 = smov [#allocation2]  }
   0x2   :  { %s25_s19 = sshll.u32 %s1883_s18, 4  ;;  %s26_s19 = int_to_ptr.vmem [resolvable:$true] %s25_s19 }
   0x3   :  { %s1847_s20 = scalar_lea.vmem %s26_s19, 4608  ;;  %p1852_p1 = scmp.lt.s32.totalorder %s26_s19, %s26_s19 }
   0x4   :  { %p1848_p0 = scmp.ne.s32.totalorder %s26_s19, %s1847_s20  ;;  %p1853_p2 = scmp.lt.s32.totalorder %s1847_s20, %s1847_s20 }
   0x6   :  { %p1854_p3 = por %p1853_p2, %p1852_p1 }
   0x8   :  { %p1855_p4 = pnand %p1854_p3, %p1848_p0 }
   0xa   :  { %1858 = shalt.err (!%p1855_p4)
}
   0xb   :  { %s1884_s21 = smov 512   ;;  %s1885_s22 = smov 32  }
   0xc   :  { %31 = dma.hbm_to_vmem [thread:$0]  %s2631_s4, 4608, %s26_s19, [#allocation3], %s1884_s21, %s1884_s21, %s1885_s22  }
   0xd   :  { %1879 = dma.done.wait [#allocation3], 4608  }
   0xe   :  { %1880 = vsyncadd [#allocation3], 4294962688  ;;  %v2633_v0 = vmov 0.0   ;;  %v1935_v1 = vld [vmem:[%s2627_s0 + $0x8] sm:$0xff]  ;;  %v1940_v2 = vld [vmem:[%s2627_s0] sm:$0xff]  ;;  %s1887_s29 = smov 111   ;;  %v236_v8 = vlaneseq }
   0xf   :  { %150 = vmatprep.mubr.f32.mxu0 %v2633_v0  ;;  %221 = vmatprep.mubr.f32.mxu1 %v2633_v0  ;;  %v1949_v3 = vld [vmem:[%s2627_s0 + $0x18] sm:$0xff]  ;;  %vm82_vm0 = vcmask 64512   ;;  %v1954_v4 = vld [vmem:[%s2627_s0 + $0x10] sm:$0xff]  ;;  %v75_v5 = vld [vmem:[%s2628_s1] sm:$0xff]  ;;  %s1888_s0 = smov 112   ;;  %s1889_s10 = smov 113  }
  0x10   :  { %323 = vrot.lane.b32.xlu0 %v1935_v1, %s1887_s29  ;;  %321 = vrot.lane.b32.xlu1 %v1940_v2, %s1887_s29  ;;  %s1890_s11 = smov 127   ;;  %s1891_s12 = smov 1   ;;  %v1895_v6 = vmov 0   ;;  %v1744_v7 = vld [vmem:[%s2630_s3 + $0x8] sm:$0xff]  ;;  %v2030_v9 = vand.u32 127, %v236_v8  ;;  %v2035_v13 = vld [vmem:[#allocation2 + $0x100] sm:$0xff] }
  0x11   :  { %116 = vmatprep.subr.mxu0 %v1935_v1  ;;  %187 = vmatprep.subr.mxu1 %v1949_v3  ;;  %s1892_s13 = smov 15   ;;  %s1893_s14 = smov 16   ;;  %v2033_v12 = vld [vmem:[#allocation2 + $0x108] sm:$0xff]  ;;  %v2044_v20 = vld [vmem:[#allocation2 + $0xe0] sm:$0xff]  ;;  %v2060_v33 = vld [vmem:[#allocation2 + $0x110] sm:$0xff]  ;;  %vm378_vm9 = vcmask 588800  }
  0x12   :  { %117 = vmatpush1.msra.mxu0 %v1940_v2  ;;  %188 = vmatpush1.msra.mxu1 %v1954_v4  ;;  %s1894_s15 = smov 17   ;;  %vm329_vm1 = vcmp.lt.s32.totalorder %v2030_v9, 111  ;;  %vm316_vm2 = vcmp.lt.s32.totalorder %v2030_v9, 112  ;;  %v2046_v21 = vld [vmem:[#allocation2 + $0xe8] sm:$0xff]  ;;  %vm303_vm3 = vcmp.lt.s32.totalorder %v2030_v9, 113  ;;  %v2062_v34 = vld [vmem:[#allocation2 + $0xc0] sm:$0xff] }
  0x13   :  { %1742 = vmatmul.mubr.msk.f32.vlgmr.msra.gmra.mxu0 %vm82_vm0, %v75_v5  ;;  %1743 = vmatmul.mubr.msk.f32.vlgmr.msra.gmra.mxu1 %vm82_vm0, %v75_v5  ;;  %v2055_v28 = vld [vmem:[#allocation2 + $0xc8] sm:$0xff]  ;;  %v2064_v35 = vld [vmem:[#allocation2 + $0x118] sm:$0xff]  ;;  %vm290_vm4 = vcmp.lt.s32.totalorder %v2030_v9, 127  ;;  %v2080_v48 = vld [vmem:[#allocation2 + $0xf0] sm:$0xff]  ;;  %vm277_vm5 = vcmp.lt.s32.totalorder %v2030_v9, 1  ;;  %vm264_vm6 = vcmp.lt.s32.totalorder %v2030_v9, 15 }
  0x14   :  { %325 = vrot.lane.b32.xlu0 %v1954_v4, %s1887_s29  ;;  %310 = vrot.lane.b32.xlu1 %v1935_v1, %s1888_s0  ;;  %v2076_v44 = vld [vmem:[#allocation2 + $0xa8] sm:$0xff]  ;;  %v2085_v51 = vld [vmem:[#allocation2 + $0xa0] sm:$0xff]  ;;  %v2087_v52 = vld [vmem:[#allocation2 + $0xf8] sm:$0xff]  ;;  %vm251_vm7 = vcmp.lt.s32.totalorder %v2030_v9, 16  ;;  %vm238_vm8 = vcmp.lt.s32.totalorder %v2030_v9, 17  ;;  %s1896_s8 = smov [#allocation5]  }
  0x15   :  { %446 = vmatprep.mubr.f32.mxu0 %v2633_v0  ;;  %517 = vmatprep.mubr.f32.mxu1 %v2633_v0  ;;  %v2083_v50 = vld [vmem:[#allocation2 + $0x88] sm:$0xff]  ;;  %v2089_v53 = vld [vmem:[#allocation2 + $0x80] sm:$0xff]  ;;  %v2104_v5 = vld [vmem:[#allocation2 + $0xd0] sm:$0xff]  ;;  %s1733_s9 = sshll.u32 %s1896_s8, 4  ;;  %s1734_s9 = int_to_ptr.vmem [resolvable:$true] %s1733_s9 }
  0x16   :  { %1789 = vset.pattern.permute.xlu0 %v1895_v6  ;;  %1790 = vset.pattern.permute.xlu1 %v1895_v6  ;;  %v351_v59 = vmul.f32 %v2083_v50, %v1935_v1  ;;  %v350_v63 = vmul.f32 %v2089_v53, %v1940_v2  ;;  %v2106_v6 = vld [vmem:[#allocation2 + $0xd8] sm:$0xff]  ;;  %p1864_p6 = scmp.lt.s32.totalorder %s1734_s9, %s1734_s9 }
  0x18   :  { %312 = vrot.lane.b32.xlu0 %v1954_v4, %s1888_s0  ;;  %308 = vrot.lane.b32.xlu1 %v1940_v2, %s1888_s0 }
  0x1c   :  { %297 = vrot.lane.b32.xlu0 %v1935_v1, %s1889_s10  ;;  %299 = vrot.lane.b32.xlu1 %v1954_v4, %s1889_s10 }
  0x20   :  { %327 = vrot.lane.b32.xlu0 %v1949_v3, %s1887_s29  ;;  %295 = vrot.lane.b32.xlu1 %v1940_v2, %s1889_s10 }
  0x24   :  { %284 = vrot.lane.b32.xlu0 %v1935_v1, %s1890_s11  ;;  %286 = vrot.lane.b32.xlu1 %v1954_v4, %s1890_s11 }
  0x28   :  { %314 = vrot.lane.b32.xlu0 %v1949_v3, %s1888_s0  ;;  %282 = vrot.lane.b32.xlu1 %v1940_v2, %s1890_s11 }
  0x2c   :  { %301 = vrot.lane.b32.xlu0 %v1949_v3, %s1889_s10  ;;  %269 = vrot.lane.b32.xlu1 %v1940_v2, %s1891_s12 }
  0x30   :  { %271 = vrot.lane.b32.xlu0 %v1935_v1, %s1891_s12  ;;  %288 = vrot.lane.b32.xlu1 %v1949_v3, %s1890_s11 }
  0x34   :  { %275 = vrot.lane.b32.xlu0 %v1949_v3, %s1891_s12  ;;  %256 = vrot.lane.b32.xlu1 %v1940_v2, %s1892_s13 }
  0x38   :  { %258 = vrot.lane.b32.xlu0 %v1935_v1, %s1892_s13  ;;  %262 = vrot.lane.b32.xlu1 %v1949_v3, %s1892_s13 }
  0x3c   :  { %243 = vrot.lane.b32.xlu0 %v1940_v2, %s1893_s14  ;;  %245 = vrot.lane.b32.xlu1 %v1935_v1, %s1893_s14 }
  0x40   :  { %273 = vrot.lane.b32.xlu0 %v1954_v4, %s1891_s12  ;;  %249 = vrot.lane.b32.xlu1 %v1949_v3, %s1893_s14 }
  0x44   :  { %228 = vrot.lane.b32.xlu0 %v1940_v2, %s1894_s15  ;;  %230 = vrot.lane.b32.xlu1 %v1935_v1, %s1894_s15 }
  0x48   :  { %260 = vrot.lane.b32.xlu0 %v1954_v4, %s1892_s13  ;;  %234 = vrot.lane.b32.xlu1 %v1949_v3, %s1894_s15 }
  0x4c   :  { %247 = vrot.lane.b32.xlu0 %v1954_v4, %s1893_s14  ;;  %232 = vrot.lane.b32.xlu1 %v1954_v4, %s1894_s15 }
  0x50   :  { %375 = vperm.xlu0 %1789, %v1744_v7  }
  0x82   :  { %v324_v10 = vpop.permute.xlu0 %323  ;;  %v322_v11 = vpop.permute.xlu1 %321 }
  0x83   :  { %v332_v14 = vsel %vm329_vm1, %v322_v11, %v324_v10 }
  0x84   :  { %v366_v19 = vmul.f32 %v332_v14, %v2035_v13  ;;  %v2115_v14 = vld [vmem:[#allocation2 + $0xb0] sm:$0xff] }
  0x86   :  { %v326_v15 = vpop.permute.xlu0 %325  ;;  %v311_v16 = vpop.permute.xlu1 %310 }
  0x87   :  { %v331_v17 = vsel %vm329_vm1, %v324_v10, %v326_v15 }
  0x88   :  { %v367_v18 = vmul.f32 %v331_v17, %v2033_v12  ;;  %v2121_v17 = vld [vmem:[#allocation2 + $0x98] sm:$0xff] }
  0x8a   :  { %v313_v22 = vpop.permute.xlu0 %312  ;;  %v309_v23 = vpop.permute.xlu1 %308  ;;  %396 = vmatprep.subr.mxu0 %v367_v18 }
  0x8b   :  { %v318_v24 = vsel %vm316_vm2, %v311_v16, %v313_v22  ;;  %v319_v25 = vsel %vm316_vm2, %v309_v23, %v311_v16  ;;  %397 = vmatpush1.msra.mxu0 %v366_v19  ;;  %v2119_v16 = vld [vmem:[#allocation2 + $0x68] sm:$0xff] }
  0x8c   :  { %v362_v26 = vmul.f32 %v319_v25, %v2044_v20  ;;  %v363_v27 = vmul.f32 %v318_v24, %v2046_v21 }
  0x8e   :  { %v298_v29 = vpop.permute.xlu0 %297  ;;  %v300_v30 = vpop.permute.xlu1 %299  ;;  %398 = vmatprep.subr.mxu0 %v363_v27 }
  0x8f   :  { %v305_v31 = vsel %vm303_vm3, %v298_v29, %v300_v30  ;;  %399 = vmatpush1.msra.mxu0 %v362_v26 }
  0x90   :  { %v359_v32 = vmul.f32 %v305_v31, %v2055_v28  ;;  %v2136_v31 = vld [vmem:[#allocation2 + $0x60] sm:$0xff] }
  0x92   :  { %v328_v36 = vpop.permute.xlu0 %327  ;;  %v296_v37 = vpop.permute.xlu1 %295  ;;  %400 = vmatprep.subr.mxu0 %v359_v32 }
  0x93   :  { %v330_v38 = vsel %vm329_vm1, %v326_v15, %v328_v36  ;;  %v333_v39 = vsel %vm329_vm1, %v328_v36, %v322_v11  ;;  %v306_v40 = vsel %vm303_vm3, %v296_v37, %v298_v29  ;;  %v2117_v15 = vld [vmem:[#allocation2 + $0xb8] sm:$0xff] }
  0x94   :  { %v368_v41 = vmul.f32 %v330_v38, %v2060_v33  ;;  %v358_v42 = vmul.f32 %v306_v40, %v2062_v34  ;;  %v369_v43 = vmul.f32 %v333_v39, %v2064_v35  ;;  %v2144_v40 = vld [vmem:[#allocation2 + $0x40] sm:$0xff] }
  0x96   :  { %v285_v45 = vpop.permute.xlu0 %284  ;;  %467 = vmatprep.subr.mxu1 %v369_v43  ;;  %v287_v46 = vpop.permute.xlu1 %286  ;;  %401 = vmatpush1.msra.mxu0 %v358_v42 }
  0x97   :  { %v292_v47 = vsel %vm290_vm4, %v285_v45, %v287_v46  ;;  %468 = vmatpush1.msra.mxu1 %v368_v41 }
  0x98   :  { %v355_v49 = vmul.f32 %v292_v47, %v2076_v44  ;;  %v2155_v47 = vld [vmem:[#allocation2 + $0x28] sm:$0xff] }
  0x9a   :  { %v315_v54 = vpop.permute.xlu0 %314  ;;  %v283_v55 = vpop.permute.xlu1 %282  ;;  %402 = vmatprep.subr.mxu0 %v355_v49 }
  0x9b   :  { %v317_v56 = vsel %vm316_vm2, %v313_v22, %v315_v54  ;;  %v320_v57 = vsel %vm316_vm2, %v315_v54, %v309_v23  ;;  %v293_v58 = vsel %vm290_vm4, %v283_v55, %v285_v45  ;;  %v2123_v22 = vld [vmem:[#allocation2 + $0x90] sm:$0xff] }
  0x9c   :  { %v364_v60 = vmul.f32 %v317_v56, %v2080_v48  ;;  %v354_v61 = vmul.f32 %v293_v58, %v2085_v51  ;;  %v365_v62 = vmul.f32 %v320_v57, %v2087_v52  ;;  %v352_v32 = vmul.f32 %v2123_v22, %v1954_v4  ;;  %v2160_v57 = vld [vmem:[#allocation2 + $0x70] sm:$0xff]  ;;  %v2162_v58 = vld [vmem:[#allocation2 + $0x20] sm:$0xff] }
  0x9e   :  { %v302_v7 = vpop.permute.xlu0 %301  ;;  %469 = vmatprep.subr.mxu1 %v365_v62  ;;  %v270_v8 = vpop.permute.xlu1 %269  ;;  %403 = vmatpush1.msra.mxu0 %v354_v61 }
  0x9f   :  { %v304_v1 = vsel %vm303_vm3, %v300_v30, %v302_v7  ;;  %v307_v10 = vsel %vm303_vm3, %v302_v7, %v296_v37  ;;  %470 = vmatpush1.msra.mxu1 %v364_v60  ;;  %404 = vmatprep.subr.mxu0 %v351_v59  ;;  %v353_v30 = vmul.f32 %v2121_v17, %v1949_v3  ;;  %v2146_v3 = vld [vmem:[#allocation2 + $0x48] sm:$0xff]  ;;  %v2164_v59 = vld [vmem:[#allocation2 + $0x78] sm:$0xff] }
  0xa0   :  { %v360_v11 = vmul.f32 %v304_v1, %v2104_v5  ;;  %v361_v2 = vmul.f32 %v307_v10, %v2106_v6  ;;  %405 = vmatpush1.msra.mxu0 %v350_v63 }
  0xa2   :  { %v272_v18 = vpop.permute.xlu0 %271  ;;  %471 = vmatprep.subr.mxu1 %v361_v2  ;;  %v289_v19 = vpop.permute.xlu1 %288 }
  0xa3   :  { %v280_v23 = vsel %vm277_vm5, %v270_v8, %v272_v18  ;;  %v291_v24 = vsel %vm290_vm4, %v287_v46, %v289_v19  ;;  %v294_v25 = vsel %vm290_vm4, %v289_v19, %v283_v55  ;;  %472 = vmatpush1.msra.mxu1 %v360_v11  ;;  %v2176_v11 = vld [vmem:[#allocation2 + $0x8] sm:$0xff] }
  0xa4   :  { %v356_v26 = vmul.f32 %v291_v24, %v2115_v14  ;;  %v357_v27 = vmul.f32 %v294_v25, %v2117_v15  ;;  %v347_v29 = vmul.f32 %v280_v23, %v2119_v16  ;;  %v2181_v24 = vld [vmem:[#allocation2 + $0x50] sm:$0xff]  ;;  %v2183_v25 = vld [vmem:[#allocation2 + $0x58] sm:$0xff] }
  0xa6   :  { %v276_v36 = vpop.permute.xlu0 %275  ;;  %473 = vmatprep.subr.mxu1 %v357_v27  ;;  %v257_v37 = vpop.permute.xlu1 %256  ;;  %406 = vmatprep.subr.mxu0 %v347_v29 }
  0xa7   :  { %v281_v38 = vsel %vm277_vm5, %v276_v36, %v270_v8  ;;  %474 = vmatpush1.msra.mxu1 %v356_v26  ;;  %v2185_v26 = vld [vmem:[#allocation2] sm:$0xff] }
  0xa8   :  { %v346_v39 = vmul.f32 %v281_v38, %v2136_v31  ;;  %475 = vmatprep.subr.mxu1 %v353_v30 }
  0xa9   :  { %476 = vmatpush1.msra.mxu1 %v352_v32 }
  0xaa   :  { %v259_v41 = vpop.permute.xlu0 %258  ;;  %v263_v4 = vpop.permute.xlu1 %262  ;;  %407 = vmatpush1.msra.mxu0 %v346_v39 }
  0xab   :  { %v267_v42 = vsel %vm264_vm6, %v257_v37, %v259_v41  ;;  %v268_v43 = vsel %vm264_vm6, %v263_v4, %v257_v37 }
  0xac   :  { %v342_v45 = vmul.f32 %v268_v43, %v2144_v40  ;;  %v343_v46 = vmul.f32 %v267_v42, %v2146_v3  ;;  %v2196_v42 = vld [vmem:[#allocation2 + $0x30] sm:$0xff]  ;;  %v2198_v43 = vld [vmem:[#allocation2 + $0x38] sm:$0xff] }
  0xad   :  { %2638 = vst [vmem:[#allocation8_spill] sm:$0xff] %v2198_v43 }
  0xae   :  { %v244_v49 = vpop.permute.xlu0 %243  ;;  %v246_v54 = vpop.permute.xlu1 %245  ;;  %408 = vmatprep.subr.mxu0 %v343_v46 }
  0xaf   :  { %v254_v55 = vsel %vm251_vm7, %v244_v49, %v246_v54  ;;  %409 = vmatpush1.msra.mxu0 %v342_v45 }
  0xb0   :  { %v339_v56 = vmul.f32 %v254_v55, %v2155_v47  ;;  %v2207_v55 = vld [vmem:[#allocation2 + $0x18] sm:$0xff] }
  0xb1   :  { %2639 = vst [vmem:[#allocation9_spill] sm:$0xff] %v2207_v55 }
  0xb2   :  { %v274_v60 = vpop.permute.xlu0 %273  ;;  %v250_v61 = vpop.permute.xlu1 %249  ;;  %410 = vmatprep.subr.mxu0 %v339_v56 }
  0xb3   :  { %v278_v62 = vsel %vm277_vm5, %v274_v60, %v276_v36  ;;  %v279_v63 = vsel %vm277_vm5, %v272_v18, %v274_v60  ;;  %v255_v7 = vsel %vm251_vm7, %v250_v61, %v244_v49 }
  0xb4   :  { %v348_v8 = vmul.f32 %v279_v63, %v2160_v57  ;;  %v338_v1 = vmul.f32 %v255_v7, %v2162_v58  ;;  %v349_v10 = vmul.f32 %v278_v62, %v2164_v59  ;;  %v2213_v63 = vld [vmem:[#allocation2 + $0x10] sm:$0xff] }
  0xb5   :  { %2640 = vst [vmem:[#allocation10_spill] sm:$0xff] %v2213_v63 }
  0xb6   :  { %v229_v2 = vpop.permute.xlu0 %228  ;;  %477 = vmatprep.subr.mxu1 %v349_v10  ;;  %v231_v19 = vpop.permute.xlu1 %230  ;;  %411 = vmatpush1.msra.mxu0 %v338_v1 }
  0xb7   :  { %v241_v18 = vsel %vm238_vm8, %v229_v2, %v231_v19  ;;  %478 = vmatpush1.msra.mxu1 %v348_v8 }
  0xb8   :  { %v335_v23 = vmul.f32 %v241_v18, %v2176_v11 }
  0xba   :  { %v261_v27 = vpop.permute.xlu0 %260  ;;  %v235_v29 = vpop.permute.xlu1 %234  ;;  %412 = vmatprep.subr.mxu0 %v335_v23 }
  0xbb   :  { %v265_v30 = vsel %vm264_vm6, %v261_v27, %v263_v4  ;;  %v266_v32 = vsel %vm264_vm6, %v259_v41, %v261_v27  ;;  %v242_v36 = vsel %vm238_vm8, %v235_v29, %v229_v2  ;;  %v370_v4 = vld [vmem:[%s2629_s2] sm:$0xff] }
  0xbc   :  { %v344_v37 = vmul.f32 %v266_v32, %v2181_v24  ;;  %v345_v38 = vmul.f32 %v265_v30, %v2183_v25  ;;  %v334_v39 = vmul.f32 %v242_v36, %v2185_v26 }
  0xbe   :  { %v248_v45 = vpop.permute.xlu0 %247  ;;  %479 = vmatprep.subr.mxu1 %v345_v38  ;;  %v233_v41 = vpop.permute.xlu1 %232  ;;  %413 = vmatpush1.msra.mxu0 %v334_v39 }
  0xbf   :  { %v252_v46 = vsel %vm251_vm7, %v248_v45, %v250_v61  ;;  %v253_v49 = vsel %vm251_vm7, %v246_v54, %v248_v45  ;;  %v239_v56 = vsel %vm238_vm8, %v233_v41, %v235_v29  ;;  %480 = vmatpush1.msra.mxu1 %v344_v37  ;;  %v240_v7 = vsel %vm238_vm8, %v231_v19, %v233_v41 }
  0xc0   :  { %v340_v60 = vmul.f32 %v253_v49, %v2196_v42  ;;  %v341_v62 = vmul.f32 %v252_v46, %v2198_v43  ;;  %1745 = vmatmul.mubr.msk.f32.vlgmr.msra.gmra.mxu0 %vm378_vm9, %v370_v4  ;;  %v337_v54 = vmul.f32 %v239_v56, %v2207_v55  ;;  %v336_v61 = vmul.f32 %v240_v7, %v2213_v63 }
  0xc1   :  { %707 = vmatprep.mubr.f32.mxu0 %v2633_v0 }
  0xc2   :  { %481 = vmatprep.subr.mxu1 %v341_v62 }
  0xc3   :  { %482 = vmatpush1.msra.mxu1 %v340_v60 }
  0xc4   :  { %483 = vmatprep.subr.mxu1 %v337_v54 }
  0xc5   :  { %484 = vmatpush1.msra.mxu1 %v336_v61 }
  0xc6   :  { %1746 = vmatmul.mubr.msk.f32.vlgmr.msra.gmra.mxu1 %vm378_vm9, %v370_v4 }
  0xc7   :  { %778 = vmatprep.mubr.f32.mxu1 %v2633_v0 }
  0xcb   :  { %v376_v10 = vpop.permute.xlu0 %375 }
  0xd3   :  { %v152_v8 = vpop.f32.mrf.mxu0  ;;  %v223_v2 = vpop.f32.mrf.mxu1 }
  0xd5   :  { %v154_v1 = vpop.f32.mrf.mxu0  ;;  %v225_v29 = vpop.f32.mrf.mxu1 }
 0x180   :  { %v448_v19 = vpop.f32.mrf.mxu0 }
 0x181   :  { %v449_v18 = vadd.f32 %v448_v19, %v376_v10 }
 0x182   :  { %v450_v23 = vpop.f32.mrf.mxu0 }
 0x183   :  { %v451_v27 = vadd.f32 %v450_v23, %v376_v10  ;;  %v524_v30 = vmax.f32 %v449_v18, 0.0 }
 0x185   :  { %v525_v32 = vmax.f32 %v451_v27, 0.0 }
 0x186   :  { %v519_v36 = vpop.f32.mrf.mxu1 }
 0x187   :  { %v520_v37 = vadd.f32 %v519_v36, %v376_v10  ;;  %v528_v41 = vadd.f32 %v525_v32, %v524_v30 }
 0x188   :  { %v521_v38 = vpop.f32.mrf.mxu1 }
 0x189   :  { %v526_v39 = vmax.f32 %v520_v37, 0.0  ;;  %v522_v45 = vadd.f32 %v521_v38, %v376_v10  ;;  %v76_v10 = vld [vmem:[%s2630_s3] sm:$0xff] }
 0x18b   :  { %v527_v4 = vmax.f32 %v522_v45, 0.0  ;;  %v529_v46 = vadd.f32 %v528_v41, %v526_v39  ;;  %v1747_v41 = vld [vmem:[%s2630_s3 + $0x10] sm:$0xff] }
 0x18d   :  { %v530_v49 = vadd.f32 %v529_v46, %v527_v4 }
 0x18f   :  { %531 = vadd.xlane.f32.xlu1 %v530_v49 }
 0x218   :  { %v532_v56 = vpop.xlane.xlu1 %531 }
 0x219   :  { %v534_v60 = vmul.f32 0.001953125, %v532_v56 }
 0x21b   :  { %v535_v62 = vsub.f32 %v524_v30, %v534_v60  ;;  %v536_v7 = vsub.f32 %v525_v32, %v534_v60  ;;  %v537_v54 = vsub.f32 %v526_v39, %v534_v60  ;;  %v538_v61 = vsub.f32 %v527_v4, %v534_v60 }
 0x21d   :  { %v539_v19 = vmul.f32 %v535_v62, %v535_v62  ;;  %v540_v23 = vmul.f32 %v536_v7, %v536_v7  ;;  %v541_v18 = vmul.f32 %v537_v54, %v537_v54  ;;  %v542_v0 = vmul.f32 %v538_v61, %v538_v61 }
 0x21f   :  { %v543_v27 = vadd.f32 %v540_v23, %v539_v19 }
 0x221   :  { %v544_v36 = vadd.f32 %v543_v27, %v541_v18 }
 0x223   :  { %v545_v63 = vadd.f32 %v544_v36, %v542_v0  ;;  %v1748_v0 = vld [vmem:[%s2630_s3 + $0x18] sm:$0xff] }
 0x225   :  { %546 = vadd.xlane.f32.xlu0 %v545_v63 }
 0x23b   :  { %79 = vperm.xlu0 %1789, %v76_v10  }
 0x2ae   :  { %v547_v37 = vpop.xlane.xlu0 %546 }
 0x2af   :  { %v548_v38 = vmul.f32 0.001953125, %v547_v37 }
 0x2b1   :  { %v551_v45 = vadd.f32 1e-05, %v548_v38 }
 0x2b3   :  { %1791 = vrsqrt.f32 %v551_v45 }
 0x2b6   :  { %v80_v7 = vpop.permute.xlu0 %79 }
 0x2b7   :  { %v153_v18 = vadd.f32 %v152_v8, %v80_v7  ;;  %v155_v27 = vadd.f32 %v154_v1, %v80_v7  ;;  %v224_v36 = vadd.f32 %v223_v2, %v80_v7 }
 0x2c0   :  { %v1792_v46 = vpop.eup %1791 }
 0x2c1   :  { %v553_v49 = vmul.f32 %v1792_v46, %v1747_v41  ;;  %v226_v46 = vadd.f32 %v225_v29, %v80_v7 }
 0x2c3   :  { %556 = vperm.xlu1 %1790, %v553_v49   ;;  %v565_v63 = vmul.f32 %v553_v49, %v534_v60 }
 0x2c5   :  { %v566_v56 = vsub.f32 %v1748_v0, %v565_v63 }
 0x2c7   :  { %569 = vperm.xlu1 %1790, %v566_v56  }
 0x33e   :  { %v557_v62 = vpop.permute.xlu1 %556 }
 0x33f   :  { %v559_v54 = vmul.f32 %v557_v62, %v524_v30  ;;  %v560_v61 = vmul.f32 %v557_v62, %v525_v32  ;;  %v561_v19 = vmul.f32 %v557_v62, %v526_v39  ;;  %v562_v23 = vmul.f32 %v557_v62, %v527_v4 }
 0x342   :  { %v570_v10 = vpop.permute.xlu1 %569 }
 0x343   :  { %v572_v37 = vadd.f32 %v570_v10, %v559_v54  ;;  %v573_v38 = vadd.f32 %v570_v10, %v560_v61  ;;  %v574_v45 = vadd.f32 %v570_v10, %v561_v19  ;;  %v575_v41 = vadd.f32 %v570_v10, %v562_v23 }
 0x345   :  { %v576_v55 = vadd.f32 %v572_v37, %v153_v18  ;;  %v577_v43 = vadd.f32 %v573_v38, %v155_v27  ;;  %v578_v60 = vadd.f32 %v574_v45, %v224_v36  ;;  %v579_v63 = vadd.f32 %v575_v41, %v226_v46  ;;  %v1749_v37 = vld [vmem:[%s2630_s3 + $0x20] sm:$0xff]  ;;  %v1750_v41 = vld [vmem:[%s2630_s3 + $0x28] sm:$0xff] }
 0x347   :  { %v580_v49 = vmax.f32 %v576_v55, 0.0  ;;  %v581_v0 = vmax.f32 %v577_v43, 0.0  ;;  %v582_v56 = vmax.f32 %v578_v60, 0.0  ;;  %v583_v32 = vmax.f32 %v579_v63, 0.0 }
 0x349   :  { %v584_v30 = vadd.f32 %v581_v0, %v580_v49 }
 0x34b   :  { %v585_v39 = vadd.f32 %v584_v30, %v582_v56 }
 0x34d   :  { %v586_v4 = vadd.f32 %v585_v39, %v583_v32 }
 0x34f   :  { %587 = vadd.xlane.f32.xlu1 %v586_v4 }
 0x3d8   :  { %v588_v8 = vpop.xlane.xlu1 %587 }
 0x3d9   :  { %v589_v1 = vmul.f32 0.001953125, %v588_v8 }
 0x3db   :  { %v590_v2 = vsub.f32 %v580_v49, %v589_v1  ;;  %v591_v62 = vsub.f32 %v581_v0, %v589_v1  ;;  %v592_v54 = vsub.f32 %v582_v56, %v589_v1  ;;  %v593_v61 = vsub.f32 %v583_v32, %v589_v1 }
 0x3dd   :  { %v594_v19 = vmul.f32 %v590_v2, %v590_v2  ;;  %v595_v29 = vmul.f32 %v591_v62, %v591_v62  ;;  %v596_v7 = vmul.f32 %v592_v54, %v592_v54  ;;  %v597_v18 = vmul.f32 %v593_v61, %v593_v61 }
 0x3df   :  { %v598_v23 = vadd.f32 %v595_v29, %v594_v19 }
 0x3e1   :  { %v599_v55 = vadd.f32 %v598_v23, %v596_v7 }
 0x3e3   :  { %v600_v43 = vadd.f32 %v599_v55, %v597_v18 }
 0x3e5   :  { %601 = vadd.xlane.f32.xlu0 %v600_v43 }
 0x46e   :  { %v602_v27 = vpop.xlane.xlu0 %601 }
 0x46f   :  { %v603_v36 = vmul.f32 0.001953125, %v602_v27 }
 0x471   :  { %v606_v10 = vadd.f32 1e-05, %v603_v36 }
 0x473   :  { %1793 = vrsqrt.f32 %v606_v10 }
 0x480   :  { %v1794_v38 = vpop.eup %1793 }
 0x481   :  { %v608_v45 = vmul.f32 %v1794_v38, %v1749_v37 }
 0x483   :  { %611 = vperm.xlu0 %1789, %v608_v45   ;;  %v620_v46 = vmul.f32 %v608_v45, %v589_v1 }
 0x485   :  { %v621_v60 = vsub.f32 %v1750_v41, %v620_v46 }
 0x487   :  { %624 = vperm.xlu1 %1790, %v621_v60  }
 0x4fe   :  { %v612_v63 = vpop.permute.xlu0 %611 }
 0x4ff   :  { %v614_v30 = vmul.f32 %v612_v63, %v580_v49  ;;  %v615_v39 = vmul.f32 %v612_v63, %v581_v0  ;;  %v616_v4 = vmul.f32 %v612_v63, %v582_v56  ;;  %v617_v8 = vmul.f32 %v612_v63, %v583_v32  ;;  %v1751_v49 = vld [vmem:[%s2628_s1 + $0x8] sm:$0xff]  ;;  %v1756_v56 = vld [vmem:[%s2630_s3 + $0x38] sm:$0xff] }
 0x500   :  { %v2641_v0 = vmov 0.0  }
 0x502   :  { %v625_v2 = vpop.permute.xlu1 %624 }
 0x503   :  { %v2238_v62 = vadd.f32 %v625_v2, %v614_v30  ;;  %v2240_v54 = vadd.f32 %v625_v2, %v615_v39  ;;  %v2242_v61 = vadd.f32 %v625_v2, %v616_v4  ;;  %v2244_v19 = vadd.f32 %v625_v2, %v617_v8 }
 0x505   :  { %744 = vmatprep.subr.mxu1 %v2244_v19  ;;  %873 = vrot.lane.b32.xlu0 %v2242_v61, %s1887_s29 }
 0x506   :  { %871 = vrot.lane.b32.xlu1 %v2240_v54, %s1887_s29  ;;  %673 = vmatprep.subr.mxu0 %v2240_v54 }
 0x507   :  { %674 = vmatpush1.msra.mxu0 %v2238_v62  ;;  %745 = vmatpush1.msra.mxu1 %v2242_v61 }
 0x508   :  { %1753 = vmatmul.mubr.msk.f32.vlgmr.msra.gmra.mxu0 %vm82_vm0, %v1751_v49  ;;  %1754 = vmatmul.mubr.msk.f32.vlgmr.msra.gmra.mxu1 %vm82_vm0, %v1751_v49 }
 0x509   :  { %859 = vrot.lane.b32.xlu0 %v2240_v54, %s1888_s0  ;;  %993 = vmatprep.mubr.f32.mxu0 %v2641_v0 }
 0x50a   :  { %869 = vrot.lane.b32.xlu1 %v2238_v62, %s1887_s29  ;;  %1064 = vmatprep.mubr.f32.mxu1 %v2641_v0 }
 0x50d   :  { %857 = vrot.lane.b32.xlu0 %v2238_v62, %s1888_s0 }
 0x50e   :  { %861 = vrot.lane.b32.xlu1 %v2242_v61, %s1888_s0 }
 0x511   :  { %849 = vrot.lane.b32.xlu0 %v2242_v61, %s1889_s10 }
 0x512   :  { %847 = vrot.lane.b32.xlu1 %v2240_v54, %s1889_s10 }
 0x515   :  { %845 = vrot.lane.b32.xlu0 %v2238_v62, %s1889_s10 }
 0x516   :  { %875 = vrot.lane.b32.xlu1 %v2244_v19, %s1887_s29 }
 0x519   :  { %837 = vrot.lane.b32.xlu0 %v2242_v61, %s1890_s11 }
 0x51a   :  { %835 = vrot.lane.b32.xlu1 %v2240_v54, %s1890_s11 }
 0x51d   :  { %833 = vrot.lane.b32.xlu0 %v2238_v62, %s1890_s11 }
 0x51e   :  { %863 = vrot.lane.b32.xlu1 %v2244_v19, %s1888_s0 }
 0x521   :  { %821 = vrot.lane.b32.xlu0 %v2238_v62, %s1891_s12 }
 0x522   :  { %851 = vrot.lane.b32.xlu1 %v2244_v19, %s1889_s10 }
 0x525   :  { %839 = vrot.lane.b32.xlu0 %v2244_v19, %s1890_s11 }
 0x526   :  { %823 = vrot.lane.b32.xlu1 %v2240_v54, %s1891_s12 }
 0x529   :  { %809 = vrot.lane.b32.xlu0 %v2238_v62, %s1892_s13 }
 0x52a   :  { %827 = vrot.lane.b32.xlu1 %v2244_v19, %s1891_s12 }
 0x52d   :  { %815 = vrot.lane.b32.xlu0 %v2244_v19, %s1892_s13 }
 0x52e   :  { %811 = vrot.lane.b32.xlu1 %v2240_v54, %s1892_s13 }
 0x531   :  { %799 = vrot.lane.b32.xlu0 %v2240_v54, %s1893_s14 }
 0x532   :  { %797 = vrot.lane.b32.xlu1 %v2238_v62, %s1893_s14 }
 0x535   :  { %803 = vrot.lane.b32.xlu0 %v2244_v19, %s1893_s14 }
 0x536   :  { %825 = vrot.lane.b32.xlu1 %v2242_v61, %s1891_s12 }
 0x539   :  { %787 = vrot.lane.b32.xlu0 %v2240_v54, %s1894_s15 }
 0x53a   :  { %785 = vrot.lane.b32.xlu1 %v2238_v62, %s1894_s15 }
 0x53d   :  { %791 = vrot.lane.b32.xlu0 %v2244_v19, %s1894_s15 }
 0x53e   :  { %813 = vrot.lane.b32.xlu1 %v2242_v61, %s1892_s13 }
 0x541   :  { %789 = vrot.lane.b32.xlu0 %v2242_v61, %s1894_s15 }
 0x542   :  { %801 = vrot.lane.b32.xlu1 %v2242_v61, %s1893_s14 }
 0x546   :  { %923 = vperm.xlu1 %1790, %v1756_v56  }
 0x577   :  { %v874_v32 = vpop.permute.xlu0 %873 }
 0x578   :  { %v872_v1 = vpop.permute.xlu1 %871 }
 0x579   :  { %v878_v29 = vsel %vm329_vm1, %v872_v1, %v874_v32 }
 0x57a   :  { %v914_v7 = vmul.f32 %v878_v29, %v2033_v12 }
 0x57b   :  { %v860_v23 = vpop.permute.xlu0 %859 }
 0x57c   :  { %v870_v18 = vpop.permute.xlu1 %869  ;;  %943 = vmatprep.subr.mxu0 %v914_v7 }
 0x57d   :  { %v879_v55 = vsel %vm329_vm1, %v870_v18, %v872_v1 }
 0x57e   :  { %v913_v43 = vmul.f32 %v879_v55, %v2035_v13  ;;  %v897_v55 = vmul.f32 %v2238_v62, %v2089_v53 }
 0x57f   :  { %v858_v27 = vpop.permute.xlu0 %857 }
 0x580   :  { %v867_v36 = vsel %vm316_vm2, %v858_v27, %v860_v23  ;;  %v862_v10 = vpop.permute.xlu1 %861  ;;  %944 = vmatpush1.msra.mxu0 %v913_v43 }
 0x581   :  { %v909_v37 = vmul.f32 %v867_v36, %v2044_v20  ;;  %v866_v38 = vsel %vm316_vm2, %v860_v23, %v862_v10 }
 0x582   :  { %v910_v12 = vmul.f32 %v866_v38, %v2046_v21  ;;  %v900_v38 = vmul.f32 %v2244_v19, %v2121_v17 }
 0x583   :  { %v850_v45 = vpop.permute.xlu0 %849 }
 0x584   :  { %v848_v41 = vpop.permute.xlu1 %847  ;;  %945 = vmatprep.subr.mxu0 %v910_v12 }
 0x585   :  { %v854_v46 = vsel %vm303_vm3, %v848_v41, %v850_v45  ;;  %946 = vmatpush1.msra.mxu0 %v909_v37 }
 0x586   :  { %v906_v13 = vmul.f32 %v854_v46, %v2055_v28 }
 0x587   :  { %v846_v60 = vpop.permute.xlu0 %845 }
 0x588   :  { %v855_v63 = vsel %vm303_vm3, %v846_v60, %v848_v41  ;;  %v876_v30 = vpop.permute.xlu1 %875  ;;  %947 = vmatprep.subr.mxu0 %v906_v13 }
 0x589   :  { %v905_v20 = vmul.f32 %v855_v63, %v2062_v34  ;;  %v877_v21 = vsel %vm329_vm1, %v874_v32, %v876_v30  ;;  %v880_v39 = vsel %vm329_vm1, %v876_v30, %v870_v18 }
 0x58a   :  { %v915_v4 = vmul.f32 %v877_v21, %v2060_v33  ;;  %v916_v8 = vmul.f32 %v880_v39, %v2064_v35 }
 0x58b   :  { %v838_v2 = vpop.permute.xlu0 %837  ;;  %948 = vmatpush1.msra.mxu0 %v905_v20 }
 0x58c   :  { %1014 = vmatprep.subr.mxu1 %v916_v8  ;;  %v836_v28 = vpop.permute.xlu1 %835 }
 0x58d   :  { %v842_v49 = vsel %vm290_vm4, %v836_v28, %v838_v2  ;;  %1015 = vmatpush1.msra.mxu1 %v915_v4 }
 0x58e   :  { %v902_v34 = vmul.f32 %v842_v49, %v2076_v44  ;;  %v898_v44 = vmul.f32 %v2240_v54, %v2083_v50 }
 0x58f   :  { %v834_v56 = vpop.permute.xlu0 %833 }
 0x590   :  { %v843_v32 = vsel %vm290_vm4, %v834_v56, %v836_v28  ;;  %v864_v1 = vpop.permute.xlu1 %863  ;;  %949 = vmatprep.subr.mxu0 %v902_v34 }
 0x591   :  { %v901_v33 = vmul.f32 %v843_v32, %v2085_v51  ;;  %v865_v35 = vsel %vm316_vm2, %v862_v10, %v864_v1  ;;  %v868_v29 = vsel %vm316_vm2, %v864_v1, %v858_v27  ;;  %v1755_v32 = vld [vmem:[%s2629_s2 + $0x8] sm:$0xff] }
 0x592   :  { %v911_v7 = vmul.f32 %v865_v35, %v2080_v48  ;;  %v912_v23 = vmul.f32 %v868_v29, %v2087_v52 }
 0x593   :  { %v822_v18 = vpop.permute.xlu0 %821  ;;  %950 = vmatpush1.msra.mxu0 %v901_v33 }
 0x594   :  { %1016 = vmatprep.subr.mxu1 %v912_v23  ;;  %v852_v51 = vpop.permute.xlu1 %851  ;;  %951 = vmatprep.subr.mxu0 %v898_v44  ;;  %v2642_v23 = vld [vmem:[#allocation8_spill] sm:$0xff] }
 0x595   :  { %v853_v43 = vsel %vm303_vm3, %v850_v45, %v852_v51  ;;  %v856_v27 = vsel %vm303_vm3, %v852_v51, %v846_v60  ;;  %1017 = vmatpush1.msra.mxu1 %v911_v7  ;;  %952 = vmatpush1.msra.mxu0 %v897_v55  ;;  %v899_v45 = vmul.f32 %v2242_v61, %v2123_v22  ;;  %v2644_v51 = vld [vmem:[#allocation10_spill] sm:$0xff] }
 0x596   :  { %v907_v48 = vmul.f32 %v853_v43, %v2104_v5  ;;  %v908_v50 = vmul.f32 %v856_v27, %v2106_v6 }
 0x597   :  { %v840_v52 = vpop.permute.xlu0 %839 }
 0x598   :  { %v841_v54 = vsel %vm290_vm4, %v838_v2, %v840_v52  ;;  %v844_v53 = vsel %vm290_vm4, %v840_v52, %v834_v56  ;;  %1018 = vmatprep.subr.mxu1 %v908_v50  ;;  %v824_v62 = vpop.permute.xlu1 %823 }
 0x599   :  { %v903_v36 = vmul.f32 %v841_v54, %v2115_v14  ;;  %v904_v10 = vmul.f32 %v844_v53, %v2117_v15  ;;  %v831_v37 = vsel %vm277_vm5, %v822_v18, %v824_v62  ;;  %1019 = vmatpush1.msra.mxu1 %v907_v48 }
 0x59a   :  { %v894_v5 = vmul.f32 %v831_v37, %v2119_v16 }
 0x59b   :  { %v810_v6 = vpop.permute.xlu0 %809  ;;  %1020 = vmatprep.subr.mxu1 %v904_v10 }
 0x59c   :  { %v828_v12 = vpop.permute.xlu1 %827  ;;  %953 = vmatprep.subr.mxu0 %v894_v5  ;;  %1021 = vmatpush1.msra.mxu1 %v903_v36 }
 0x59d   :  { %v832_v14 = vsel %vm277_vm5, %v828_v12, %v822_v18  ;;  %1022 = vmatprep.subr.mxu1 %v900_v38  ;;  %v2643_v18 = vld [vmem:[#allocation9_spill] sm:$0xff] }
 0x59e   :  { %v893_v15 = vmul.f32 %v832_v14, %v2136_v31  ;;  %1023 = vmatpush1.msra.mxu1 %v899_v45 }
 0x59f   :  { %v816_v41 = vpop.permute.xlu0 %815 }
 0x5a0   :  { %v820_v16 = vsel %vm264_vm6, %v816_v41, %v810_v6  ;;  %v812_v46 = vpop.permute.xlu1 %811  ;;  %954 = vmatpush1.msra.mxu0 %v893_v15 }
 0x5a1   :  { %v889_v17 = vmul.f32 %v820_v16, %v2144_v40  ;;  %v819_v19 = vsel %vm264_vm6, %v810_v6, %v812_v46 }
 0x5a2   :  { %v890_v22 = vmul.f32 %v819_v19, %v2146_v3 }
 0x5a3   :  { %v800_v61 = vpop.permute.xlu0 %799 }
 0x5a4   :  { %v798_v13 = vpop.permute.xlu1 %797  ;;  %955 = vmatprep.subr.mxu0 %v890_v22 }
 0x5a5   :  { %v807_v31 = vsel %vm251_vm7, %v798_v13, %v800_v61  ;;  %956 = vmatpush1.msra.mxu0 %v889_v17 }
 0x5a6   :  { %v886_v60 = vmul.f32 %v807_v31, %v2155_v47 }
 0x5a7   :  { %v804_v63 = vpop.permute.xlu0 %803 }
 0x5a8   :  { %v808_v30 = vsel %vm251_vm7, %v804_v63, %v798_v13  ;;  %v826_v20 = vpop.permute.xlu1 %825  ;;  %957 = vmatprep.subr.mxu0 %v886_v60 }
 0x5a9   :  { %v885_v40 = vmul.f32 %v808_v30, %v2162_v58  ;;  %v829_v3 = vsel %vm277_vm5, %v826_v20, %v828_v12  ;;  %v830_v21 = vsel %vm277_vm5, %v824_v62, %v826_v20 }
 0x5aa   :  { %v895_v39 = vmul.f32 %v830_v21, %v2160_v57  ;;  %v896_v4 = vmul.f32 %v829_v3, %v2164_v59  ;;  %v1752_v21 = vld [vmem:[%s2630_s3 + $0x30] sm:$0xff] }
 0x5ab   :  { %v788_v8 = vpop.permute.xlu0 %787  ;;  %958 = vmatpush1.msra.mxu0 %v885_v40 }
 0x5ac   :  { %1024 = vmatprep.subr.mxu1 %v896_v4  ;;  %v786_v47 = vpop.permute.xlu1 %785 }
 0x5ad   :  { %v795_v2 = vsel %vm238_vm8, %v786_v47, %v788_v8  ;;  %1025 = vmatpush1.msra.mxu1 %v895_v39 }
 0x5ae   :  { %v882_v58 = vmul.f32 %v795_v2, %v2176_v11 }
 0x5af   :  { %v792_v28 = vpop.permute.xlu0 %791 }
 0x5b0   :  { %v796_v49 = vsel %vm238_vm8, %v792_v28, %v786_v47  ;;  %v814_v34 = vpop.permute.xlu1 %813  ;;  %959 = vmatprep.subr.mxu0 %v882_v58  ;;  %v1759_v47 = vld [vmem:[%s2630_s3 + $0x40] sm:$0xff] }
 0x5b1   :  { %v881_v57 = vmul.f32 %v796_v49, %v2185_v26  ;;  %v817_v59 = vsel %vm264_vm6, %v814_v34, %v816_v41  ;;  %v818_v56 = vsel %vm264_vm6, %v812_v46, %v814_v34 }
 0x5b2   :  { %v891_v11 = vmul.f32 %v818_v56, %v2181_v24  ;;  %v892_v1 = vmul.f32 %v817_v59, %v2183_v25 }
 0x5b3   :  { %v790_v33 = vpop.permute.xlu0 %789  ;;  %960 = vmatpush1.msra.mxu0 %v881_v57 }
 0x5b4   :  { %1026 = vmatprep.subr.mxu1 %v892_v1  ;;  %v802_v35 = vpop.permute.xlu1 %801  ;;  %1757 = vmatmul.mubr.msk.f32.vlgmr.msra.gmra.mxu0 %vm378_vm9, %v1755_v32  ;;  %v793_v26 = vsel %vm238_vm8, %v790_v33, %v792_v28  ;;  %v794_v24 = vsel %vm238_vm8, %v788_v8, %v790_v33  ;;  %v1760_v28 = vld [vmem:[%s2630_s3 + $0x48] sm:$0xff] }
 0x5b5   :  { %v805_v29 = vsel %vm251_vm7, %v802_v35, %v804_v63  ;;  %v806_v7 = vsel %vm251_vm7, %v800_v61, %v802_v35  ;;  %1027 = vmatpush1.msra.mxu1 %v891_v11  ;;  %1253 = vmatprep.mubr.f32.mxu0 %v2641_v0  ;;  %v884_v55 = vmul.f32 %v793_v26, %v2643_v18 }
 0x5b6   :  { %v887_v25 = vmul.f32 %v806_v7, %v2196_v42  ;;  %v888_v44 = vmul.f32 %v805_v29, %v2642_v23  ;;  %v883_v43 = vmul.f32 %v794_v24, %v2644_v51 }
 0x5b8   :  { %1028 = vmatprep.subr.mxu1 %v888_v44 }
 0x5b9   :  { %1029 = vmatpush1.msra.mxu1 %v887_v25 }
 0x5ba   :  { %1030 = vmatprep.subr.mxu1 %v884_v55 }
 0x5bb   :  { %1031 = vmatpush1.msra.mxu1 %v883_v43 }
 0x5bc   :  { %1758 = vmatmul.mubr.msk.f32.vlgmr.msra.gmra.mxu1 %vm378_vm9, %v1755_v32 }
 0x5bd   :  { %1324 = vmatprep.mubr.f32.mxu1 %v2641_v0 }
 0x5c1   :  { %v924_v42 = vpop.permute.xlu1 %923 }
 0x5c8   :  { %v709_v27 = vpop.f32.mrf.mxu0  ;;  %v780_v52 = vpop.f32.mrf.mxu1 }
 0x5ca   :  { %v711_v48 = vpop.f32.mrf.mxu0  ;;  %v782_v36 = vpop.f32.mrf.mxu1 }
 0x674   :  { %v995_v50 = vpop.f32.mrf.mxu0 }
 0x675   :  { %v996_v62 = vadd.f32 %v995_v50, %v924_v42 }
 0x676   :  { %v997_v54 = vpop.f32.mrf.mxu0 }
 0x677   :  { %v998_v53 = vadd.f32 %v997_v54, %v924_v42  ;;  %v1071_v5 = vmax.f32 %v996_v62, 0.0 }
 0x679   :  { %v1072_v10 = vmax.f32 %v998_v53, 0.0 }
 0x67b   :  { %v1075_v14 = vadd.f32 %v1072_v10, %v1071_v5 }
 0x67c   :  { %v1066_v37 = vpop.f32.mrf.mxu1 }
 0x67d   :  { %v1067_v6 = vadd.f32 %v1066_v37, %v924_v42 }
 0x67e   :  { %v1068_v38 = vpop.f32.mrf.mxu1 }
 0x67f   :  { %v1073_v12 = vmax.f32 %v1067_v6, 0.0  ;;  %v1069_v45 = vadd.f32 %v1068_v38, %v924_v42 }
 0x681   :  { %v1074_v15 = vmax.f32 %v1069_v45, 0.0  ;;  %v1076_v41 = vadd.f32 %v1075_v14, %v1073_v12 }
 0x683   :  { %v1077_v16 = vadd.f32 %v1076_v41, %v1074_v15 }
 0x685   :  { %1078 = vadd.xlane.f32.xlu0 %v1077_v16 }
 0x70e   :  { %v1079_v46 = vpop.xlane.xlu0 %1078 }
 0x70f   :  { %v1080_v17 = vmul.f32 0.001953125, %v1079_v46 }
 0x711   :  { %v1081_v19 = vsub.f32 %v1071_v5, %v1080_v17  ;;  %v1082_v22 = vsub.f32 %v1072_v10, %v1080_v17  ;;  %v1083_v61 = vsub.f32 %v1073_v12, %v1080_v17  ;;  %v1084_v13 = vsub.f32 %v1074_v15, %v1080_v17 }
 0x713   :  { %v1085_v31 = vmul.f32 %v1081_v19, %v1081_v19  ;;  %v1086_v60 = vmul.f32 %v1082_v22, %v1082_v22  ;;  %v1087_v63 = vmul.f32 %v1083_v61, %v1083_v61  ;;  %v1088_v20 = vmul.f32 %v1084_v13, %v1084_v13  ;;  %v1761_v22 = vld [vmem:[%s2630_s3 + $0x50] sm:$0xff] }
 0x715   :  { %v1089_v30 = vadd.f32 %v1086_v60, %v1085_v31  ;;  %v1762_v31 = vld [vmem:[%s2630_s3 + $0x58] sm:$0xff] }
 0x717   :  { %v1090_v40 = vadd.f32 %v1089_v30, %v1087_v63 }
 0x719   :  { %v1091_v3 = vadd.f32 %v1090_v40, %v1088_v20 }
 0x71b   :  { %1092 = vadd.xlane.f32.xlu1 %v1091_v3 }
 0x72c   :  { %637 = vperm.xlu1 %1790, %v1752_v21  }
 0x7a4   :  { %v1093_v39 = vpop.xlane.xlu1 %1092 }
 0x7a5   :  { %v1094_v4 = vmul.f32 0.001953125, %v1093_v39 }
 0x7a7   :  { %v1097_v8 = vadd.f32 1e-05, %v1094_v4 }
 0x7a8   :  { %v638_v59 = vpop.permute.xlu1 %637 }
 0x7a9   :  { %1795 = vrsqrt.f32 %v1097_v8  ;;  %v710_v33 = vadd.f32 %v709_v27, %v638_v59  ;;  %v712_v35 = vadd.f32 %v711_v48, %v638_v59  ;;  %v781_v26 = vadd.f32 %v780_v52, %v638_v59 }
 0x7aa   :  { %v783_v44 = vadd.f32 %v782_v36, %v638_v59 }
 0x7b6   :  { %v1796_v2 = vpop.eup %1795 }
 0x7b7   :  { %v1099_v58 = vmul.f32 %v1796_v2, %v1759_v47 }
 0x7b9   :  { %1102 = vperm.xlu0 %1789, %v1099_v58   ;;  %v1111_v49 = vmul.f32 %v1099_v58, %v1080_v17  ;;  %v1763_v58 = vld [vmem:[%s2628_s1 + $0x10] sm:$0xff] }
 0x7bb   :  { %v1112_v34 = vsub.f32 %v1760_v28, %v1111_v49 }
 0x7bd   :  { %1115 = vperm.xlu0 %1789, %v1112_v34  }
 0x834   :  { %v1103_v57 = vpop.permute.xlu0 %1102 }
 0x835   :  { %v1105_v56 = vmul.f32 %v1103_v57, %v1071_v5  ;;  %v1106_v32 = vmul.f32 %v1103_v57, %v1072_v10  ;;  %v1107_v11 = vmul.f32 %v1103_v57, %v1073_v12  ;;  %v1108_v1 = vmul.f32 %v1103_v57, %v1074_v15  ;;  %v1803_v57 = vld [vmem:[#allocation2 + $0x108] sm:$0xff] }
 0x838   :  { %v1116_v29 = vpop.permute.xlu0 %1115 }
 0x839   :  { %v1118_v7 = vadd.f32 %v1116_v29, %v1105_v56  ;;  %v1119_v24 = vadd.f32 %v1116_v29, %v1106_v32  ;;  %v1120_v25 = vadd.f32 %v1116_v29, %v1107_v11  ;;  %v1121_v23 = vadd.f32 %v1116_v29, %v1108_v1  ;;  %v1804_v1 = vld [vmem:[#allocation2 + $0x100] sm:$0xff] }
 0x83b   :  { %v1122_v18 = vadd.f32 %v1118_v7, %v710_v33  ;;  %v1123_v55 = vadd.f32 %v1119_v24, %v712_v35  ;;  %v1124_v51 = vadd.f32 %v1120_v25, %v781_v26  ;;  %v1125_v42 = vadd.f32 %v1121_v23, %v783_v44  ;;  %v1805_v7 = vld [vmem:[#allocation2 + $0xe0] sm:$0xff]  ;;  %v1806_v23 = vld [vmem:[#allocation2 + $0xe8] sm:$0xff] }
 0x83d   :  { %v1126_v43 = vmax.f32 %v1122_v18, 0.0  ;;  %v1127_v50 = vmax.f32 %v1123_v55, 0.0  ;;  %v1128_v54 = vmax.f32 %v1124_v51, 0.0  ;;  %v1129_v62 = vmax.f32 %v1125_v42, 0.0 }
 0x83f   :  { %v1130_v53 = vadd.f32 %v1127_v50, %v1126_v43 }
 0x841   :  { %v1131_v10 = vadd.f32 %v1130_v53, %v1128_v54 }
 0x843   :  { %v1132_v37 = vadd.f32 %v1131_v10, %v1129_v62 }
 0x845   :  { %1133 = vadd.xlane.f32.xlu1 %v1132_v37 }
 0x8ce   :  { %v1134_v27 = vpop.xlane.xlu1 %1133 }
 0x8cf   :  { %v1135_v48 = vmul.f32 0.001953125, %v1134_v27 }
 0x8d1   :  { %v1136_v52 = vsub.f32 %v1126_v43, %v1135_v48  ;;  %v1137_v5 = vsub.f32 %v1127_v50, %v1135_v48  ;;  %v1138_v6 = vsub.f32 %v1128_v54, %v1135_v48  ;;  %v1139_v38 = vsub.f32 %v1129_v62, %v1135_v48 }
 0x8d3   :  { %v1140_v12 = vmul.f32 %v1136_v52, %v1136_v52  ;;  %v1141_v36 = vmul.f32 %v1137_v5, %v1137_v5  ;;  %v1142_v45 = vmul.f32 %v1138_v6, %v1138_v6  ;;  %v1143_v15 = vmul.f32 %v1139_v38, %v1139_v38  ;;  %v1810_v5 = vld [vmem:[#allocation2 + $0x118] sm:$0xff] }
 0x8d5   :  { %v1144_v14 = vadd.f32 %v1141_v36, %v1140_v12 }
 0x8d7   :  { %v1145_v41 = vadd.f32 %v1144_v14, %v1142_v45  ;;  %v1811_v45 = vld [vmem:[#allocation2 + $0xa8] sm:$0xff] }
 0x8d9   :  { %v1146_v16 = vadd.f32 %v1145_v41, %v1143_v15 }
 0x8db   :  { %1147 = vadd.xlane.f32.xlu0 %v1146_v16 }
 0x964   :  { %v1148_v46 = vpop.xlane.xlu0 %1147 }
 0x965   :  { %v1149_v17 = vmul.f32 0.001953125, %v1148_v46  ;;  %v1812_v46 = vld [vmem:[#allocation2 + $0xa0] sm:$0xff] }
 0x967   :  { %v1152_v19 = vadd.f32 1e-05, %v1149_v17 }
 0x969   :  { %1797 = vrsqrt.f32 %v1152_v19 }
 0x976   :  { %v1798_v61 = vpop.eup %1797 }
 0x977   :  { %v1154_v13 = vmul.f32 %v1798_v61, %v1761_v22  ;;  %v1813_v61 = vld [vmem:[#allocation2 + $0xf0] sm:$0xff] }
 0x979   :  { %1157 = vperm.xlu0 %1789, %v1154_v13   ;;  %v1166_v60 = vmul.f32 %v1154_v13, %v1135_v48  ;;  %v1809_v48 = vld [vmem:[#allocation2 + $0x110] sm:$0xff] }
 0x97b   :  { %v1167_v63 = vsub.f32 %v1762_v31, %v1166_v60  ;;  %v1814_v31 = vld [vmem:[#allocation2 + $0xf8] sm:$0xff] }
 0x97d   :  { %1170 = vperm.xlu1 %1790, %v1167_v63   ;;  %v1815_v63 = vld [vmem:[#allocation2 + $0x88] sm:$0xff] }
 0x9f4   :  { %v1158_v30 = vpop.permute.xlu0 %1157 }
 0x9f5   :  { %v1160_v20 = vmul.f32 %v1158_v30, %v1126_v43  ;;  %v1161_v40 = vmul.f32 %v1158_v30, %v1127_v50  ;;  %v1162_v3 = vmul.f32 %v1158_v30, %v1128_v54  ;;  %v1163_v21 = vmul.f32 %v1158_v30, %v1129_v62  ;;  %v1807_v43 = vld [vmem:[#allocation2 + $0xc8] sm:$0xff]  ;;  %v1808_v62 = vld [vmem:[#allocation2 + $0xc0] sm:$0xff] }
 0x9f8   :  { %v1171_v39 = vpop.permute.xlu1 %1170 }
 0x9f9   :  { %v2450_v4 = vadd.f32 %v1171_v39, %v1160_v20  ;;  %v2452_v8 = vadd.f32 %v1171_v39, %v1161_v40  ;;  %v2454_v47 = vadd.f32 %v1171_v39, %v1162_v3  ;;  %v2456_v2 = vadd.f32 %v1171_v39, %v1163_v21  ;;  %v1816_v40 = vld [vmem:[#allocation2 + $0x80] sm:$0xff] }
 0x9fb   :  { %1290 = vmatprep.subr.mxu1 %v2456_v2  ;;  %1419 = vrot.lane.b32.xlu0 %v2454_v47, %s1887_s29  ;;  %v1444_v30 = vmul.f32 %v1815_v63, %v2452_v8  ;;  %v1443_v3 = vmul.f32 %v1816_v40, %v2450_v4 }
 0x9fc   :  { %1417 = vrot.lane.b32.xlu1 %v2452_v8, %s1887_s29  ;;  %1219 = vmatprep.subr.mxu0 %v2452_v8 }
 0x9fd   :  { %1220 = vmatpush1.msra.mxu0 %v2450_v4  ;;  %1291 = vmatpush1.msra.mxu1 %v2454_v47 }
 0x9fe   :  { %1765 = vmatmul.mubr.msk.f32.vlgmr.msra.gmra.mxu0 %vm82_vm0, %v1763_v58  ;;  %1766 = vmatmul.mubr.msk.f32.vlgmr.msra.gmra.mxu1 %vm82_vm0, %v1763_v58 }
 0x9ff   :  { %1405 = vrot.lane.b32.xlu0 %v2452_v8, %s1888_s0  ;;  %1539 = vmatprep.mubr.f32.mxu0 %v2641_v0 }
 0xa00   :  { %1415 = vrot.lane.b32.xlu1 %v2450_v4, %s1887_s29  ;;  %1610 = vmatprep.mubr.f32.mxu1 %v2641_v0  ;;  %v1768_v0 = vld [vmem:[%s2630_s3 + $0x68] sm:$0xff] }
 0xa03   :  { %1403 = vrot.lane.b32.xlu0 %v2450_v4, %s1888_s0 }
 0xa04   :  { %1407 = vrot.lane.b32.xlu1 %v2454_v47, %s1888_s0 }
 0xa07   :  { %1395 = vrot.lane.b32.xlu0 %v2454_v47, %s1889_s10 }
 0xa08   :  { %1393 = vrot.lane.b32.xlu1 %v2452_v8, %s1889_s10 }
 0xa0b   :  { %1391 = vrot.lane.b32.xlu0 %v2450_v4, %s1889_s10 }
 0xa0c   :  { %1421 = vrot.lane.b32.xlu1 %v2456_v2, %s1887_s29 }
 0xa0f   :  { %1383 = vrot.lane.b32.xlu0 %v2454_v47, %s1890_s11 }
 0xa10   :  { %1381 = vrot.lane.b32.xlu1 %v2452_v8, %s1890_s11 }
 0xa13   :  { %1379 = vrot.lane.b32.xlu0 %v2450_v4, %s1890_s11 }
 0xa14   :  { %1409 = vrot.lane.b32.xlu1 %v2456_v2, %s1888_s0 }
 0xa17   :  { %1367 = vrot.lane.b32.xlu0 %v2450_v4, %s1891_s12 }
 0xa18   :  { %1397 = vrot.lane.b32.xlu1 %v2456_v2, %s1889_s10 }
 0xa1b   :  { %1385 = vrot.lane.b32.xlu0 %v2456_v2, %s1890_s11 }
 0xa1c   :  { %1369 = vrot.lane.b32.xlu1 %v2452_v8, %s1891_s12 }
 0xa1f   :  { %1355 = vrot.lane.b32.xlu0 %v2450_v4, %s1892_s13 }
 0xa20   :  { %1373 = vrot.lane.b32.xlu1 %v2456_v2, %s1891_s12 }
 0xa23   :  { %1361 = vrot.lane.b32.xlu0 %v2456_v2, %s1892_s13 }
 0xa24   :  { %1357 = vrot.lane.b32.xlu1 %v2452_v8, %s1892_s13 }
 0xa27   :  { %1345 = vrot.lane.b32.xlu0 %v2452_v8, %s1893_s14 }
 0xa28   :  { %1343 = vrot.lane.b32.xlu1 %v2450_v4, %s1893_s14 }
 0xa2b   :  { %1349 = vrot.lane.b32.xlu0 %v2456_v2, %s1893_s14 }
 0xa2c   :  { %1371 = vrot.lane.b32.xlu1 %v2454_v47, %s1891_s12 }
 0xa2f   :  { %1333 = vrot.lane.b32.xlu0 %v2452_v8, %s1894_s15 }
 0xa30   :  { %1331 = vrot.lane.b32.xlu1 %v2450_v4, %s1894_s15 }
 0xa33   :  { %1337 = vrot.lane.b32.xlu0 %v2456_v2, %s1894_s15 }
 0xa34   :  { %1359 = vrot.lane.b32.xlu1 %v2454_v47, %s1892_s13 }
 0xa37   :  { %1335 = vrot.lane.b32.xlu0 %v2454_v47, %s1894_s15 }
 0xa38   :  { %1347 = vrot.lane.b32.xlu1 %v2454_v47, %s1893_s14 }
 0xa3c   :  { %1469 = vperm.xlu1 %1790, %v1768_v0   ;;  %v1817_v0 = vld [vmem:[#allocation2 + $0xd0] sm:$0xff] }
 0xa6d   :  { %v1420_v28 = vpop.permute.xlu0 %1419 }
 0xa6e   :  { %v1418_v49 = vpop.permute.xlu1 %1417 }
 0xa6f   :  { %v1424_v34 = vsel %vm329_vm1, %v1418_v49, %v1420_v28 }
 0xa70   :  { %v1460_v59 = vmul.f32 %v1803_v57, %v1424_v34 }
 0xa71   :  { %v1406_v56 = vpop.permute.xlu0 %1405 }
 0xa72   :  { %v1416_v32 = vpop.permute.xlu1 %1415  ;;  %1489 = vmatprep.subr.mxu0 %v1460_v59 }
 0xa73   :  { %v1425_v11 = vsel %vm329_vm1, %v1416_v32, %v1418_v49  ;;  %v1818_v49 = vld [vmem:[#allocation2 + $0xd8] sm:$0xff] }
 0xa74   :  { %v1459_v33 = vmul.f32 %v1804_v1, %v1425_v11  ;;  %v1820_v11 = vld [vmem:[#allocation2 + $0xb8] sm:$0xff] }
 0xa75   :  { %v1404_v35 = vpop.permute.xlu0 %1403 }
 0xa76   :  { %v1413_v26 = vsel %vm316_vm2, %v1404_v35, %v1406_v56  ;;  %v1408_v29 = vpop.permute.xlu1 %1407  ;;  %1490 = vmatpush1.msra.mxu0 %v1459_v33 }
 0xa77   :  { %v1455_v24 = vmul.f32 %v1805_v7, %v1413_v26  ;;  %v1412_v25 = vsel %vm316_vm2, %v1406_v56, %v1408_v29  ;;  %v1819_v56 = vld [vmem:[#allocation2 + $0xb0] sm:$0xff]  ;;  %v1822_v7 = vld [vmem:[#allocation2 + $0x98] sm:$0xff] }
 0xa78   :  { %v1456_v44 = vmul.f32 %v1806_v23, %v1412_v25  ;;  %v1823_v23 = vld [vmem:[#allocation2 + $0x90] sm:$0xff] }
 0xa79   :  { %v1396_v18 = vpop.permute.xlu0 %1395 }
 0xa7a   :  { %v1394_v55 = vpop.permute.xlu1 %1393  ;;  %1491 = vmatprep.subr.mxu0 %v1456_v44  ;;  %v1445_v44 = vmul.f32 %v1823_v23, %v2454_v47 }
 0xa7b   :  { %v1400_v51 = vsel %vm303_vm3, %v1394_v55, %v1396_v18  ;;  %1492 = vmatpush1.msra.mxu0 %v1455_v24  ;;  %v1446_v24 = vmul.f32 %v1822_v7, %v2456_v2  ;;  %v1825_v2 = vld [vmem:[#allocation2 + $0x40] sm:$0xff] }
 0xa7c   :  { %v1452_v50 = vmul.f32 %v1807_v43, %v1400_v51 }
 0xa7d   :  { %v1392_v42 = vpop.permute.xlu0 %1391 }
 0xa7e   :  { %v1401_v54 = vsel %vm303_vm3, %v1392_v42, %v1394_v55  ;;  %v1422_v53 = vpop.permute.xlu1 %1421  ;;  %1493 = vmatprep.subr.mxu0 %v1452_v50  ;;  %v1824_v55 = vld [vmem:[#allocation2 + $0x60] sm:$0xff] }
 0xa7f   :  { %v1451_v10 = vmul.f32 %v1808_v62, %v1401_v54  ;;  %v1423_v37 = vsel %vm329_vm1, %v1420_v28, %v1422_v53  ;;  %v1426_v27 = vsel %vm329_vm1, %v1422_v53, %v1416_v32  ;;  %v1826_v62 = vld [vmem:[#allocation2 + $0x48] sm:$0xff] }
 0xa80   :  { %v1461_v52 = vmul.f32 %v1809_v48, %v1423_v37  ;;  %v1462_v6 = vmul.f32 %v1810_v5, %v1426_v27  ;;  %v1827_v48 = vld [vmem:[#allocation2 + $0x28] sm:$0xff] }
 0xa81   :  { %v1384_v38 = vpop.permute.xlu0 %1383  ;;  %1494 = vmatpush1.msra.mxu0 %v1451_v10 }
 0xa82   :  { %1560 = vmatprep.subr.mxu1 %v1462_v6  ;;  %v1382_v12 = vpop.permute.xlu1 %1381 }
 0xa83   :  { %v1388_v36 = vsel %vm290_vm4, %v1382_v12, %v1384_v38  ;;  %1561 = vmatpush1.msra.mxu1 %v1461_v52 }
 0xa84   :  { %v1448_v14 = vmul.f32 %v1811_v45, %v1388_v36 }
 0xa85   :  { %v1380_v15 = vpop.permute.xlu0 %1379 }
 0xa86   :  { %v1389_v41 = vsel %vm290_vm4, %v1380_v15, %v1382_v12  ;;  %v1410_v16 = vpop.permute.xlu1 %1409  ;;  %1495 = vmatprep.subr.mxu0 %v1448_v14  ;;  %v1828_v12 = vld [vmem:[#allocation2 + $0x20] sm:$0xff] }
 0xa87   :  { %v1447_v17 = vmul.f32 %v1812_v46, %v1389_v41  ;;  %v1411_v19 = vsel %vm316_vm2, %v1408_v29, %v1410_v16  ;;  %v1414_v22 = vsel %vm316_vm2, %v1410_v16, %v1404_v35  ;;  %v1821_v35 = vld [vmem:[#allocation2 + $0x68] sm:$0xff]  ;;  %v1830_v16 = vld [vmem:[#allocation2 + $0x78] sm:$0xff] }
 0xa88   :  { %v1457_v13 = vmul.f32 %v1813_v61, %v1411_v19  ;;  %v1458_v60 = vmul.f32 %v1814_v31, %v1414_v22  ;;  %v1831_v61 = vld [vmem:[#allocation2 + $0x8] sm:$0xff] }
 0xa89   :  { %v1368_v20 = vpop.permute.xlu0 %1367  ;;  %1496 = vmatpush1.msra.mxu0 %v1447_v17 }
 0xa8a   :  { %1562 = vmatprep.subr.mxu1 %v1458_v60  ;;  %v1398_v21 = vpop.permute.xlu1 %1397  ;;  %1497 = vmatprep.subr.mxu0 %v1444_v30  ;;  %v1832_v30 = vld [vmem:[#allocation2] sm:$0xff] }
 0xa8b   :  { %v1399_v39 = vsel %vm303_vm3, %v1396_v18, %v1398_v21  ;;  %v1402_v58 = vsel %vm303_vm3, %v1398_v21, %v1392_v42  ;;  %1563 = vmatpush1.msra.mxu1 %v1457_v13  ;;  %1498 = vmatpush1.msra.mxu0 %v1443_v3  ;;  %v1767_v21 = vld [vmem:[%s2629_s2 + $0x10] sm:$0xff] }
 0xa8c   :  { %v1453_v28 = vmul.f32 %v1817_v0, %v1399_v39  ;;  %v1454_v8 = vmul.f32 %v1818_v49, %v1402_v58  ;;  %v1833_v39 = vld [vmem:[#allocation2 + $0x50] sm:$0xff]  ;;  %v1834_v0 = vld [vmem:[#allocation2 + $0x58] sm:$0xff] }
 0xa8d   :  { %v1386_v34 = vpop.permute.xlu0 %1385 }
 0xa8e   :  { %v1387_v57 = vsel %vm290_vm4, %v1384_v38, %v1386_v34  ;;  %v1390_v4 = vsel %vm290_vm4, %v1386_v34, %v1380_v15  ;;  %1564 = vmatprep.subr.mxu1 %v1454_v8  ;;  %v1370_v59 = vpop.permute.xlu1 %1369  ;;  %v1829_v15 = vld [vmem:[#allocation2 + $0x70] sm:$0xff] }
 0xa8f   :  { %v1449_v32 = vmul.f32 %v1819_v56, %v1387_v57  ;;  %v1450_v1 = vmul.f32 %v1820_v11, %v1390_v4  ;;  %v1377_v33 = vsel %vm277_vm5, %v1368_v20, %v1370_v59  ;;  %1565 = vmatpush1.msra.mxu1 %v1453_v28  ;;  %v1835_v56 = vld [vmem:[#allocation2 + $0x30] sm:$0xff]  ;;  %v1836_v11 = vld [vmem:[#allocation2 + $0x38] sm:$0xff] }
 0xa90   :  { %v1440_v26 = vmul.f32 %v1821_v35, %v1377_v33  ;;  %v1837_v33 = vld [vmem:[#allocation2 + $0x18] sm:$0xff] }
 0xa91   :  { %v1356_v29 = vpop.permute.xlu0 %1355  ;;  %1566 = vmatprep.subr.mxu1 %v1450_v1 }
 0xa92   :  { %v1374_v25 = vpop.permute.xlu1 %1373  ;;  %1499 = vmatprep.subr.mxu0 %v1440_v26  ;;  %1567 = vmatpush1.msra.mxu1 %v1449_v32  ;;  %v1838_v26 = vld [vmem:[#allocation2 + $0x10] sm:$0xff] }
 0xa93   :  { %v1378_v18 = vsel %vm277_vm5, %v1374_v25, %v1368_v20  ;;  %1568 = vmatprep.subr.mxu1 %v1446_v24 }
 0xa94   :  { %v1439_v51 = vmul.f32 %v1824_v55, %v1378_v18  ;;  %1569 = vmatpush1.msra.mxu1 %v1445_v44 }
 0xa95   :  { %v1362_v43 = vpop.permute.xlu0 %1361 }
 0xa96   :  { %v1366_v50 = vsel %vm264_vm6, %v1362_v43, %v1356_v29  ;;  %v1358_v42 = vpop.permute.xlu1 %1357  ;;  %1500 = vmatpush1.msra.mxu0 %v1439_v51 }
 0xa97   :  { %v1435_v54 = vmul.f32 %v1825_v2, %v1366_v50  ;;  %v1365_v53 = vsel %vm264_vm6, %v1356_v29, %v1358_v42 }
 0xa98   :  { %v1436_v47 = vmul.f32 %v1826_v62, %v1365_v53 }
 0xa99   :  { %v1346_v10 = vpop.permute.xlu0 %1345 }
 0xa9a   :  { %v1344_v37 = vpop.permute.xlu1 %1343  ;;  %1501 = vmatprep.subr.mxu0 %v1436_v47 }
 0xa9b   :  { %v1353_v27 = vsel %vm251_vm7, %v1344_v37, %v1346_v10  ;;  %1502 = vmatpush1.msra.mxu0 %v1435_v54 }
 0xa9c   :  { %v1432_v52 = vmul.f32 %v1827_v48, %v1353_v27 }
 0xa9d   :  { %v1350_v5 = vpop.permute.xlu0 %1349 }
 0xa9e   :  { %v1354_v6 = vsel %vm251_vm7, %v1350_v5, %v1344_v37  ;;  %v1372_v38 = vpop.permute.xlu1 %1371  ;;  %1503 = vmatprep.subr.mxu0 %v1432_v52 }
 0xa9f   :  { %v1431_v36 = vmul.f32 %v1828_v12, %v1354_v6  ;;  %v1375_v45 = vsel %vm277_vm5, %v1372_v38, %v1374_v25  ;;  %v1376_v14 = vsel %vm277_vm5, %v1370_v59, %v1372_v38 }
 0xaa0   :  { %v1441_v41 = vmul.f32 %v1829_v15, %v1376_v14  ;;  %v1442_v46 = vmul.f32 %v1830_v16, %v1375_v45 }
 0xaa1   :  { %v1334_v17 = vpop.permute.xlu0 %1333  ;;  %1504 = vmatpush1.msra.mxu0 %v1431_v36 }
 0xaa2   :  { %1570 = vmatprep.subr.mxu1 %v1442_v46  ;;  %v1332_v19 = vpop.permute.xlu1 %1331 }
 0xaa3   :  { %v1341_v22 = vsel %vm238_vm8, %v1332_v19, %v1334_v17  ;;  %1571 = vmatpush1.msra.mxu1 %v1441_v41 }
 0xaa4   :  { %v1428_v13 = vmul.f32 %v1831_v61, %v1341_v22 }
 0xaa5   :  { %v1338_v31 = vpop.permute.xlu0 %1337 }
 0xaa6   :  { %v1342_v60 = vsel %vm238_vm8, %v1338_v31, %v1332_v19  ;;  %v1360_v63 = vpop.permute.xlu1 %1359  ;;  %1505 = vmatprep.subr.mxu0 %v1428_v13  ;;  %v1771_v13 = vld [vmem:[%s2630_s3 + $0x70] sm:$0xff] }
 0xaa7   :  { %v1427_v20 = vmul.f32 %v1832_v30, %v1342_v60  ;;  %v1363_v40 = vsel %vm264_vm6, %v1360_v63, %v1362_v43  ;;  %v1364_v3 = vsel %vm264_vm6, %v1358_v42, %v1360_v63  ;;  %v1772_v63 = vld [vmem:[%s2630_s3 + $0x78] sm:$0xff] }
 0xaa8   :  { %v1437_v58 = vmul.f32 %v1833_v39, %v1364_v3  ;;  %v1438_v28 = vmul.f32 %v1834_v0, %v1363_v40 }
 0xaa9   :  { %v1336_v49 = vpop.permute.xlu0 %1335  ;;  %1506 = vmatpush1.msra.mxu0 %v1427_v20 }
 0xaaa   :  { %1572 = vmatprep.subr.mxu1 %v1438_v28  ;;  %v1348_v8 = vpop.permute.xlu1 %1347  ;;  %1769 = vmatmul.mubr.msk.f32.vlgmr.msra.gmra.mxu0 %vm378_vm9, %v1767_v21  ;;  %v1339_v34 = vsel %vm238_vm8, %v1336_v49, %v1338_v31  ;;  %v1340_v59 = vsel %vm238_vm8, %v1334_v17, %v1336_v49  ;;  %v1764_v17 = vld [vmem:[%s2630_s3 + $0x60] sm:$0xff] }
 0xaab   :  { %v1351_v57 = vsel %vm251_vm7, %v1348_v8, %v1350_v5  ;;  %v1352_v4 = vsel %vm251_vm7, %v1346_v10, %v1348_v8  ;;  %1573 = vmatpush1.msra.mxu1 %v1437_v58  ;;  %v1430_v35 = vmul.f32 %v1837_v33, %v1339_v34  ;;  %v1429_v29 = vmul.f32 %v1838_v26, %v1340_v59 }
 0xaac   :  { %v1433_v32 = vmul.f32 %v1835_v56, %v1352_v4  ;;  %v1434_v1 = vmul.f32 %v1836_v11, %v1351_v57 }
 0xaae   :  { %1574 = vmatprep.subr.mxu1 %v1434_v1 }
 0xaaf   :  { %1575 = vmatpush1.msra.mxu1 %v1433_v32 }
 0xab0   :  { %1576 = vmatprep.subr.mxu1 %v1430_v35 }
 0xab1   :  { %1577 = vmatpush1.msra.mxu1 %v1429_v29 }
 0xab2   :  { %1770 = vmatmul.mubr.msk.f32.vlgmr.msra.gmra.mxu1 %vm378_vm9, %v1767_v21 }
 0xab7   :  { %v1470_v23 = vpop.permute.xlu1 %1469 }
 0xabe   :  { %v1255_v7 = vpop.f32.mrf.mxu0  ;;  %v1326_v9 = vpop.f32.mrf.mxu1 }
 0xac0   :  { %v1257_v24 = vpop.f32.mrf.mxu0  ;;  %v1328_v51 = vpop.f32.mrf.mxu1 }
 0xb6a   :  { %v1541_v25 = vpop.f32.mrf.mxu0 }
 0xb6b   :  { %v1542_v55 = vadd.f32 %v1541_v25, %v1470_v23 }
 0xb6c   :  { %v1543_v44 = vpop.f32.mrf.mxu0 }
 0xb6d   :  { %v1544_v18 = vadd.f32 %v1543_v44, %v1470_v23  ;;  %v1617_v42 = vmax.f32 %v1542_v55, 0.0 }
 0xb6f   :  { %v1618_v43 = vmax.f32 %v1544_v18, 0.0 }
 0xb71   :  { %v1621_v53 = vadd.f32 %v1618_v43, %v1617_v42 }
 0xb72   :  { %v1612_v50 = vpop.f32.mrf.mxu1 }
 0xb73   :  { %v1613_v2 = vadd.f32 %v1612_v50, %v1470_v23 }
 0xb74   :  { %v1614_v54 = vpop.f32.mrf.mxu1 }
 0xb75   :  { %v1619_v62 = vmax.f32 %v1613_v2, 0.0  ;;  %v1615_v47 = vadd.f32 %v1614_v54, %v1470_v23 }
 0xb77   :  { %v1622_v10 = vadd.f32 %v1621_v53, %v1619_v62  ;;  %v1620_v37 = vmax.f32 %v1615_v47, 0.0 }
 0xb79   :  { %v1623_v27 = vadd.f32 %v1622_v10, %v1620_v37 }
 0xb7b   :  { %1624 = vadd.xlane.f32.xlu0 %v1623_v27 }
 0xc04   :  { %v1625_v48 = vpop.xlane.xlu0 %1624 }
 0xc05   :  { %v1626_v52 = vmul.f32 0.001953125, %v1625_v48 }
 0xc07   :  { %v1627_v5 = vsub.f32 %v1617_v42, %v1626_v52  ;;  %v1628_v6 = vsub.f32 %v1618_v43, %v1626_v52  ;;  %v1629_v38 = vsub.f32 %v1619_v62, %v1626_v52  ;;  %v1630_v12 = vsub.f32 %v1620_v37, %v1626_v52 }
 0xc09   :  { %v1631_v36 = vmul.f32 %v1627_v5, %v1627_v5  ;;  %v1632_v45 = vmul.f32 %v1628_v6, %v1628_v6  ;;  %v1633_v14 = vmul.f32 %v1629_v38, %v1629_v38  ;;  %v1634_v41 = vmul.f32 %v1630_v12, %v1630_v12  ;;  %v1774_v38 = vld [vmem:[%s2630_s3 + $0x88] sm:$0xff] }
 0xc0b   :  { %v1635_v15 = vadd.f32 %v1632_v45, %v1631_v36 }
 0xc0d   :  { %v1636_v16 = vadd.f32 %v1635_v15, %v1633_v14 }
 0xc0f   :  { %v1637_v46 = vadd.f32 %v1636_v16, %v1634_v41 }
 0xc11   :  { %1638 = vadd.xlane.f32.xlu1 %v1637_v46 }
 0xc22   :  { %1183 = vperm.xlu1 %1790, %v1764_v17  }
 0xc9a   :  { %v1639_v19 = vpop.xlane.xlu1 %1638 }
 0xc9b   :  { %v1640_v22 = vmul.f32 0.001953125, %v1639_v19 }
 0xc9d   :  { %v1643_v61 = vadd.f32 1e-05, %v1640_v22 }
 0xc9e   :  { %v1184_v3 = vpop.permute.xlu1 %1183 }
 0xc9f   :  { %1799 = vrsqrt.f32 %v1643_v61  ;;  %v1256_v28 = vadd.f32 %v1255_v7, %v1184_v3  ;;  %v1258_v49 = vadd.f32 %v1257_v24, %v1184_v3  ;;  %v1327_v8 = vadd.f32 %v1326_v9, %v1184_v3 }
 0xca0   :  { %v1329_v32 = vadd.f32 %v1328_v51, %v1184_v3 }
 0xcac   :  { %v1800_v31 = vpop.eup %1799 }
 0xcad   :  { %v1645_v60 = vmul.f32 %v1800_v31, %v1771_v13 }
 0xcaf   :  { %1648 = vperm.xlu0 %1789, %v1645_v60   ;;  %v1657_v30 = vmul.f32 %v1645_v60, %v1626_v52  ;;  %v1773_v52 = vld [vmem:[%s2630_s3 + $0x80] sm:$0xff]  ;;  %s1859_s3 = scalar_lea.vmem %s1734_s9, 512 }
 0xcb0   :  { %p1860_p5 = scmp.ne.s32.totalorder %s1734_s9, %s1859_s3  ;;  %p1865_p7 = scmp.lt.s32.totalorder %s1859_s3, %s1859_s3 }
 0xcb1   :  { %v1658_v20 = vsub.f32 %v1772_v63, %v1657_v30 }
 0xcb2   :  { %p1866_p8 = por %p1865_p7, %p1864_p6 }
 0xcb3   :  { %1661 = vperm.xlu0 %1789, %v1658_v20  }
 0xcb4   :  { %p1867_p9 = pnand %p1866_p8, %p1860_p5 }
 0xd2a   :  { %v1649_v40 = vpop.permute.xlu0 %1648 }
 0xd2b   :  { %v1651_v21 = vmul.f32 %v1649_v40, %v1617_v42  ;;  %v1652_v39 = vmul.f32 %v1649_v40, %v1618_v43  ;;  %v1653_v58 = vmul.f32 %v1649_v40, %v1619_v62  ;;  %v1654_v0 = vmul.f32 %v1649_v40, %v1620_v37 }
 0xd2e   :  { %v1662_v34 = vpop.permute.xlu0 %1661 }
 0xd2f   :  { %v1664_v57 = vadd.f32 %v1662_v34, %v1651_v21  ;;  %v1665_v4 = vadd.f32 %v1662_v34, %v1652_v39  ;;  %v1666_v59 = vadd.f32 %v1662_v34, %v1653_v58  ;;  %v1667_v56 = vadd.f32 %v1662_v34, %v1654_v0 }
 0xd31   :  { %v1668_v11 = vadd.f32 %v1664_v57, %v1256_v28  ;;  %v1669_v1 = vadd.f32 %v1665_v4, %v1258_v49  ;;  %v1670_v33 = vadd.f32 %v1666_v59, %v1327_v8  ;;  %v1671_v35 = vadd.f32 %v1667_v56, %v1329_v32 }
 0xd33   :  { %v1672_v26 = vmax.f32 %v1668_v11, 0.0  ;;  %v1673_v29 = vmax.f32 %v1669_v1, 0.0  ;;  %v1674_v25 = vmax.f32 %v1670_v33, 0.0  ;;  %v1675_v44 = vmax.f32 %v1671_v35, 0.0 }
 0xd35   :  { %v1676_v23 = vadd.f32 %v1673_v29, %v1672_v26 }
 0xd37   :  { %v1677_v18 = vadd.f32 %v1676_v23, %v1674_v25 }
 0xd39   :  { %v1678_v55 = vadd.f32 %v1677_v18, %v1675_v44 }
 0xd3b   :  { %1679 = vadd.xlane.f32.xlu1 %v1678_v55 }
 0xdc4   :  { %v1680_v7 = vpop.xlane.xlu1 %1679 }
 0xdc5   :  { %v1681_v24 = vmul.f32 0.001953125, %v1680_v7 }
 0xdc7   :  { %v1682_v9 = vsub.f32 %v1672_v26, %v1681_v24  ;;  %v1683_v43 = vsub.f32 %v1673_v29, %v1681_v24  ;;  %v1684_v50 = vsub.f32 %v1674_v25, %v1681_v24  ;;  %v1685_v42 = vsub.f32 %v1675_v44, %v1681_v24 }
 0xdc9   :  { %v1686_v2 = vmul.f32 %v1682_v9, %v1682_v9  ;;  %v1687_v51 = vmul.f32 %v1683_v43, %v1683_v43  ;;  %v1688_v54 = vmul.f32 %v1684_v50, %v1684_v50  ;;  %v1689_v62 = vmul.f32 %v1685_v42, %v1685_v42 }
 0xdcb   :  { %v1690_v53 = vadd.f32 %v1687_v51, %v1686_v2 }
 0xdcd   :  { %v1691_v47 = vadd.f32 %v1690_v53, %v1688_v54 }
 0xdcf   :  { %v1692_v10 = vadd.f32 %v1691_v47, %v1689_v62 }
 0xdd1   :  { %1693 = vadd.xlane.f32.xlu0 %v1692_v10 }
 0xe5a   :  { %v1694_v37 = vpop.xlane.xlu0 %1693 }
 0xe5b   :  { %v1695_v27 = vmul.f32 0.001953125, %v1694_v37 }
 0xe5d   :  { %v1698_v48 = vadd.f32 1e-05, %v1695_v27 }
 0xe5f   :  { %1801 = vrsqrt.f32 %v1698_v48 }
 0xe6c   :  { %v1802_v5 = vpop.eup %1801 }
 0xe6d   :  { %v1700_v6 = vmul.f32 %v1802_v5, %v1773_v52 }
 0xe6f   :  { %1703 = vperm.xlu0 %1789, %v1700_v6   ;;  %v1712_v12 = vmul.f32 %v1700_v6, %v1681_v24 }
 0xe71   :  { %v1713_v36 = vsub.f32 %v1774_v38, %v1712_v12 }
 0xe73   :  { %1716 = vperm.xlu1 %1790, %v1713_v36  }
 0xeea   :  { %v1704_v45 = vpop.permute.xlu0 %1703 }
 0xeeb   :  { %v1706_v14 = vmul.f32 %v1704_v45, %v1672_v26  ;;  %v1707_v15 = vmul.f32 %v1704_v45, %v1673_v29  ;;  %v1708_v41 = vmul.f32 %v1704_v45, %v1674_v25  ;;  %v1709_v16 = vmul.f32 %v1704_v45, %v1675_v44 }
 0xeee   :  { %v1717_v46 = vpop.permute.xlu1 %1716 }
 0xeef   :  { %v1719_v17 = vadd.f32 %v1717_v46, %v1706_v14  ;;  %v1720_v19 = vadd.f32 %v1717_v46, %v1707_v15  ;;  %v1721_v22 = vadd.f32 %v1717_v46, %v1708_v41  ;;  %v1722_v61 = vadd.f32 %v1717_v46, %v1709_v16 }
 0xef1   :  { %1723 = vst [vmem:[#allocation5] sm:$0xff] %v1719_v17  ;;  %1724 = vst [vmem:[#allocation5 + $0x8] sm:$0xff] %v1720_v19 }
 0xef2   :  { %1725 = vst [vmem:[#allocation5 + $0x10] sm:$0xff] %v1721_v22  ;;  %1726 = vst [vmem:[#allocation5 + $0x18] sm:$0xff] %v1722_v61 }
 0xef3   :  { %1870 = shalt.err (!%p1867_p9)
}
 0xef4   :  { %1736 = dma.vmem_to_hbm [thread:$0]  %s1734_s9, 512, %s2632_s5, [#allocation4]  }
 0xef5   :  { %1881 = dma.done.wait [#allocation4], 512  }
 0xef6   :  { %1882 = vsyncadd [#allocation4], 4294966784 }
 0xef7   :  { %1740 = vsyncpa [#allocation3], 1 }
 0xef8   :  { %1741 = vsyncpa [#allocation4], 1 }

</bundles_post_ra>
